<compile_context>
chip_gen: v6e
topology: v6e:2x2x1
jax: 0.10.0
libtpu: 0.0.40
codegen_flags: <defaults>
</compile_context>

<pallas_src>
import functools
import jax
import jax.numpy as jnp
from jax import lax
from jax.experimental import pallas as pl
from jax.experimental.pallas import tpu as pltpu

_TAPS = [(dy, dx) for dy in (-1, 0, 1) for dx in (-1, 0, 1)]   # tap = (dy+1)*3+(dx+1)
_CENTER = 4                                                    # (dy, dx) == (0, 0)
_UNROLL_BLOCKS = 4   # static-unroll threshold for the residual-block loop


def _make_fused_resblock_kernel(W, Cmid, NbHW, nblocks, matmul_dtype):
    """Fused kernel: all residual blocks for one group of Nb images, (C, Nb*HW)."""

    def kernel(x_ref, w1_ref, b1_ref, w2_ref, b2_ref, mask_ref, o_ref, pack_ref):
        # x_ref/o_ref : (C, NbHW)                lane-dense channel-major group
        # w1_ref      : (nblocks, Cmid, C)       matmul_dtype
        # b1_ref      : (nblocks, Cmid, 1)       f32 (BN folded)
        # w2_ref      : (nblocks, C, 9*Cmid)     matmul_dtype (taps stacked on K)
        # b2_ref      : (nblocks, C, 1)          f32 (BN folded)
        # mask_ref    : (9, 1, NbHW)             matmul_dtype 0/1 border masks
        # pack_ref    : VMEM scratch (9*Cmid, NbHW), matmul_dtype

        # Hoist the per-tap mask broadcasts out of the block loop (JAX does not
        # CSE broadcast_in_dim).  Center tap needs no mask / no roll.
        tap_masks = [
            None if tap == _CENTER
            else jnp.broadcast_to(mask_ref[tap], (Cmid, NbHW))
            for tap in range(9)
        ]

        def block_body(blk, x):
            # ---- 1x1 conv (channel matmul) + folded-BN bias + LeakyReLU(0.1)
            h1 = jnp.dot(w1_ref[blk], x.astype(matmul_dtype),
                         preferred_element_type=jnp.float32)       # (Cmid, NbHW)
            h1 = h1 + b1_ref[blk]                                  # lane broadcast
            h1 = jnp.maximum(h1, 0.1 * h1)                         # mul + max
            h1m = h1.astype(matmul_dtype)                          # single cast/block

            # ---- pack the 9 lane-rolled, masked taps into one (9*Cmid, NbHW)
            #      operand (rolls on the XLU; masks zero border/cross-image wrap)
            for tap, (dy, dx) in enumerate(_TAPS):
                if tap == _CENTER:
                    shifted = h1m
                else:
                    off = dy * W + dx
                    # shifted[:, p] = h1m[:, p + off]  (circular; borders masked)
                    shifted = pltpu.roll(h1m, shift=(-off) % NbHW, axis=1)
                    shifted = shifted * tap_masks[tap]
                pack_ref[tap * Cmid:(tap + 1) * Cmid, :] = shifted

            # ---- 3x3 conv = ONE matmul, contraction 9*Cmid, f32 accumulation
            acc = jnp.dot(w2_ref[blk], pack_ref[...],
                          preferred_element_type=jnp.float32)      # (C, NbHW)
            acc = acc + b2_ref[blk]

            # ---- LeakyReLU(0.1) + residual add, f32 epilogue (v5e-safe)
            return jnp.maximum(acc, 0.1 * acc) + x

        x = x_ref[...].astype(jnp.float32)                          # residual in f32
        if nblocks <= _UNROLL_BLOCKS:
            for blk in range(nblocks):       # small: fully scheduled static code
                x = block_body(blk, x)
        else:
            # large nblocks: bound live ranges / code size; weights indexed dynamically
            x = lax.fori_loop(0, nblocks, block_body, x)
        o_ref[...] = x.astype(o_ref.dtype)

    return kernel


def _make_tap_masks(H, W, Nb, dtype):
    """(9, 1, Nb*HW) 0/1 validity masks for the 3x3, pad=1 taps (precomputed in JAX)."""
    hh, ww = jnp.meshgrid(jnp.arange(H), jnp.arange(W), indexing="ij")
    hh = hh.reshape(-1)
    ww = ww.reshape(-1)
    rows = []
    for dy, dx in _TAPS:
        valid = ((hh + dy >= 0) & (hh + dy < H) & (ww + dx >= 0) & (ww + dx < W))
        rows.append(valid.astype(dtype))
    m = jnp.stack(rows)[:, None, :]              # (9, 1, HW)
    return jnp.tile(m, (1, 1, Nb))               # (9, 1, Nb*HW): pattern repeats per image


def _pack_params(params, matmul_dtype):
    """Stack per-block (BN-folded) params into kernel layout with leading nblocks axis."""
    w1s, b1s, w2s, b2s = [], [], [], []
    for (w1, b1, w2, b2) in params:
        C, Cmid = w1.shape
        w1s.append(jnp.transpose(w1))                                  # (Cmid, C)
        b1s.append(b1.reshape(Cmid, 1))
        # HWIO (3,3,Cmid,C) -> (C,3,3,Cmid) -> (C, 9*Cmid); K index = tap*Cmid + m
        w2s.append(jnp.transpose(w2, (3, 0, 1, 2)).reshape(C, 9 * Cmid))
        b2s.append(b2.reshape(C, 1))
    return (jnp.stack(w1s).astype(matmul_dtype), jnp.stack(b1s),
            jnp.stack(w2s).astype(matmul_dtype), jnp.stack(b2s))


def _num_grid_steps(N):
    # >= 2 parallel grid steps keeps both v7x TensorCores busy; pack the rest of
    # the batch into the lane dimension of each step (amortizes ~0.35us/step).
    if N >= 2 and N % 2 == 0:
        return 2
    return max(N, 1)


@functools.partial(jax.jit, static_argnames=("matmul_dtype",))
def resblock_forward(x_nchw, params, *, matmul_dtype=jnp.bfloat16):
    """params: list of (w1 (C,Cmid), b1 (Cmid,), w2 HWIO (3,3,Cmid,C), b2 (C,)), BN folded.

    Use matmul_dtype=jnp.float32 on v5e (no bf16 VPU); bf16 is MXU-native on v6e/v7x.
    """
    N, C, H, W = x_nchw.shape
    HW = H * W
    G = _num_grid_steps(N)
    Nb = N // G
    NbHW = Nb * HW

    w1_all, b1_all, w2_all, b2_all = _pack_params(params, matmul_dtype)
    nblocks, Cmid, _ = w1_all.shape
    masks = _make_tap_masks(H, W, Nb, matmul_dtype)

    # (N,C,H,W) -> (G, C, Nb*HW): lane-dense channel-major groups of Nb images.
    xg = (x_nchw.reshape(G, Nb, C, HW)
                 .transpose(0, 2, 1, 3)
                 .reshape(G, C, NbHW))

    kernel = _make_fused_resblock_kernel(W, Cmid, NbHW, nblocks, matmul_dtype)

    out = pl.pallas_call(
        kernel,
        out_shape=jax.ShapeDtypeStruct((G, C, NbHW), x_nchw.dtype),
        grid=(G,),
        in_specs=[
            pl.BlockSpec((None, C, NbHW), lambda g: (g, 0, 0)),      # x, G squeezed
            pl.BlockSpec((nblocks, Cmid, C), lambda g: (0, 0, 0)),
            pl.BlockSpec((nblocks, Cmid, 1), lambda g: (0, 0, 0)),
            pl.BlockSpec((nblocks, C, 9 * Cmid), lambda g: (0, 0, 0)),
            pl.BlockSpec((nblocks, C, 1), lambda g: (0, 0, 0)),
            pl.BlockSpec((9, 1, NbHW), lambda g: (0, 0, 0)),
        ],
        out_specs=pl.BlockSpec((None, C, NbHW), lambda g: (g, 0, 0)),
        scratch_shapes=[pltpu.VMEM((9 * Cmid, NbHW), matmul_dtype)],  # tap-packed operand
        compiler_params=pltpu.CompilerParams(
            dimension_semantics=("parallel",),
            # explicit scoped-VMEM limit: above v5e's 16 MiB default, within every
            # generation's physical VMEM for these tile sizes.
            vmem_limit_bytes=32 * 1024 * 1024,
        ),
    )(xg, w1_all, b1_all, w2_all, b2_all, masks)

    return (out.reshape(G, C, Nb, HW)
               .transpose(0, 2, 1, 3)
               .reshape(N, C, H, W))


# ---------------------------------------------------------------------------
# parameter construction (deterministic) + eval-mode BN folding
# ---------------------------------------------------------------------------
def _fold_bn(w, b_conv, gamma, beta, mean, var, eps=1e-5):
    s = gamma / jnp.sqrt(var + eps)            # (Cout,)
    w_f = w * s                                # broadcast over last (out-channel) axis
    b_f = (b_conv - mean) * s + beta
    return w_f, b_f


def make_params(key, ch, nblocks):
    cmid = ch // 2
    params = []
    for _ in range(nblocks):
        key, k1, k2, k3, k4 = jax.random.split(key, 5)
        w1 = jax.random.normal(k1, (ch, cmid), jnp.float32) * 0.1        # 1x1: (Cin, Cout)
        b1 = jax.random.normal(k2, (cmid,), jnp.float32) * 0.01
        w2 = jax.random.normal(k3, (3, 3, cmid, ch), jnp.float32) * 0.1  # 3x3: HWIO
        b2 = jax.random.normal(k4, (ch,), jnp.float32) * 0.01
        # fresh-init BatchNorm (gamma=1, beta=0, mean=0, var=1), eval mode
        g1, bt1, m1, v1 = jnp.ones(cmid), jnp.zeros(cmid), jnp.zeros(cmid), jnp.ones(cmid)
        g2, bt2, m2, v2 = jnp.ones(ch), jnp.zeros(ch), jnp.zeros(ch), jnp.ones(ch)
        w1f, b1f = _fold_bn(w1, b1, g1, bt1, m1, v1)
        w2f, b2f = _fold_bn(w2, b2, g2, bt2, m2, v2)
        params.append((w1f, b1f, w2f, b2f))
    return params


# ---------------------------------------------------------------------------
# pure-JAX reference (for correctness check)
# ---------------------------------------------------------------------------
def ref_resblock(x_nchw, params):
    x = jnp.transpose(x_nchw, (0, 2, 3, 1))
    dn = ('NHWC', 'HWIO', 'NHWC')
    for (w1, b1, w2, b2) in params:
        C, Cmid = w1.shape
        h = lax.conv_general_dilated(x, w1.reshape(1, 1, C, Cmid), (1, 1), 'VALID',
                                     dimension_numbers=dn) + b1
        h = jnp.where(h > 0, h, 0.1 * h)
        h2 = lax.conv_general_dilated(h, w2, (1, 1), 'SAME',
                                      dimension_numbers=dn) + b2
        h2 = jnp.where(h2 > 0, h2, 0.1 * h2)
        x = h2 + x
    return jnp.transpose(x, (0, 3, 1, 2))


if __name__ == "__main__":
    # N=4 -> 2 parallel grid steps x 2 images each: exercises the lane-batched
    # (C, Nb*HW) path including cross-image roll masking.
    N, ch, H, W = 4, 8, 16, 16
    nblocks = 2

    key = jax.random.PRNGKey(0)
    kx, kp = jax.random.split(key)
    x = jax.random.normal(kx, (N, ch, H, W), jnp.float32)   # NCHW like PyTorch
    params = make_params(kp, ch, nblocks)

    ref = jax.block_until_ready(ref_resblock(x, params))

    # f32 matmul path: tight check against the conv reference
    out_f32 = jax.block_until_ready(resblock_forward(x, params, matmul_dtype=jnp.float32))
    assert out_f32.shape == (N, ch, H, W)
    assert jnp.max(jnp.abs(out_f32 - ref)) < 5e-4, "f32 kernel mismatch vs JAX reference"

    # bf16 matmul operands (MXU-native on v6e/v7x), f32 accumulation + f32 epilogue
    out_bf16 = jax.block_until_ready(resblock_forward(x, params, matmul_dtype=jnp.bfloat16))
    assert out_bf16.shape == (N, ch, H, W)
    assert jnp.max(jnp.abs(out_bf16 - ref)) < 5e-2, "bf16 kernel mismatch vs JAX reference"

    print("KERNEL_OK")
</pallas_src>

<mosaic_0001>
module attributes {stable_mosaic.version = 11 : i64} {
  func.func @kernel(%arg0: i32, %arg1: memref<1x8x512xf32, #tpu.memory_space<vmem>>, %arg2: memref<2x4x8xf32, #tpu.memory_space<vmem>>, %arg3: memref<2x4x1xf32, #tpu.memory_space<vmem>>, %arg4: memref<2x8x36xf32, #tpu.memory_space<vmem>>, %arg5: memref<2x8x1xf32, #tpu.memory_space<vmem>>, %arg6: memref<9x1x512xf32, #tpu.memory_space<vmem>>, %arg7: memref<1x8x512xf32, #tpu.memory_space<vmem>>, %arg8: memref<36x512xf32, #tpu.memory_space<vmem>>) attributes {dimension_semantics = [#tpu.dimension_semantics<parallel>], iteration_bounds = array<i64: 2>, scalar_prefetch = 0 : i64, scratch_operands = 1 : i64, tpu.core_type = #tpu.core_type<tc>, window_params = [{transform_indices = @transform_0, window_bounds = array<i64: 1, 8, 512>}, {pipeline_mode = #tpu.pipeline_mode<synchronous>, transform_indices = @transform_1, window_bounds = array<i64: 2, 4, 8>}, {pipeline_mode = #tpu.pipeline_mode<synchronous>, transform_indices = @transform_2, window_bounds = array<i64: 2, 4, 1>}, {pipeline_mode = #tpu.pipeline_mode<synchronous>, transform_indices = @transform_3, window_bounds = array<i64: 2, 8, 36>}, {pipeline_mode = #tpu.pipeline_mode<synchronous>, transform_indices = @transform_4, window_bounds = array<i64: 2, 8, 1>}, {pipeline_mode = #tpu.pipeline_mode<synchronous>, transform_indices = @transform_5, window_bounds = array<i64: 9, 1, 512>}, {transform_indices = @transform_6, window_bounds = array<i64: 1, 8, 512>}]} {
    %c0 = arith.constant 0 : index
    %c0_0 = arith.constant 0 : index
    %c0_1 = arith.constant 0 : index
    %0 = vector.load %arg6[%c0, %c0_0, %c0_1] : memref<9x1x512xf32, #tpu.memory_space<vmem>>, vector<1x1x512xf32>
    %1 = vector.shape_cast %0 : vector<1x1x512xf32> to vector<1x512xf32>
    %2 = vector.shape_cast %1 : vector<1x512xf32> to vector<1x512xf32>
    %3 = vector.broadcast %2 : vector<1x512xf32> to vector<4x512xf32>
    %c1 = arith.constant 1 : index
    %c0_2 = arith.constant 0 : index
    %c0_3 = arith.constant 0 : index
    %4 = vector.load %arg6[%c1, %c0_2, %c0_3] : memref<9x1x512xf32, #tpu.memory_space<vmem>>, vector<1x1x512xf32>
    %5 = vector.shape_cast %4 : vector<1x1x512xf32> to vector<1x512xf32>
    %6 = vector.shape_cast %5 : vector<1x512xf32> to vector<1x512xf32>
    %7 = vector.broadcast %6 : vector<1x512xf32> to vector<4x512xf32>
    %c2 = arith.constant 2 : index
    %c0_4 = arith.constant 0 : index
    %c0_5 = arith.constant 0 : index
    %8 = vector.load %arg6[%c2, %c0_4, %c0_5] : memref<9x1x512xf32, #tpu.memory_space<vmem>>, vector<1x1x512xf32>
    %9 = vector.shape_cast %8 : vector<1x1x512xf32> to vector<1x512xf32>
    %10 = vector.shape_cast %9 : vector<1x512xf32> to vector<1x512xf32>
    %11 = vector.broadcast %10 : vector<1x512xf32> to vector<4x512xf32>
    %c3 = arith.constant 3 : index
    %c0_6 = arith.constant 0 : index
    %c0_7 = arith.constant 0 : index
    %12 = vector.load %arg6[%c3, %c0_6, %c0_7] : memref<9x1x512xf32, #tpu.memory_space<vmem>>, vector<1x1x512xf32>
    %13 = vector.shape_cast %12 : vector<1x1x512xf32> to vector<1x512xf32>
    %14 = vector.shape_cast %13 : vector<1x512xf32> to vector<1x512xf32>
    %15 = vector.broadcast %14 : vector<1x512xf32> to vector<4x512xf32>
    %c5 = arith.constant 5 : index
    %c0_8 = arith.constant 0 : index
    %c0_9 = arith.constant 0 : index
    %16 = vector.load %arg6[%c5, %c0_8, %c0_9] : memref<9x1x512xf32, #tpu.memory_space<vmem>>, vector<1x1x512xf32>
    %17 = vector.shape_cast %16 : vector<1x1x512xf32> to vector<1x512xf32>
    %18 = vector.shape_cast %17 : vector<1x512xf32> to vector<1x512xf32>
    %19 = vector.broadcast %18 : vector<1x512xf32> to vector<4x512xf32>
    %c6 = arith.constant 6 : index
    %c0_10 = arith.constant 0 : index
    %c0_11 = arith.constant 0 : index
    %20 = vector.load %arg6[%c6, %c0_10, %c0_11] : memref<9x1x512xf32, #tpu.memory_space<vmem>>, vector<1x1x512xf32>
    %21 = vector.shape_cast %20 : vector<1x1x512xf32> to vector<1x512xf32>
    %22 = vector.shape_cast %21 : vector<1x512xf32> to vector<1x512xf32>
    %23 = vector.broadcast %22 : vector<1x512xf32> to vector<4x512xf32>
    %c7 = arith.constant 7 : index
    %c0_12 = arith.constant 0 : index
    %c0_13 = arith.constant 0 : index
    %24 = vector.load %arg6[%c7, %c0_12, %c0_13] : memref<9x1x512xf32, #tpu.memory_space<vmem>>, vector<1x1x512xf32>
    %25 = vector.shape_cast %24 : vector<1x1x512xf32> to vector<1x512xf32>
    %26 = vector.shape_cast %25 : vector<1x512xf32> to vector<1x512xf32>
    %27 = vector.broadcast %26 : vector<1x512xf32> to vector<4x512xf32>
    %c8 = arith.constant 8 : index
    %c0_14 = arith.constant 0 : index
    %c0_15 = arith.constant 0 : index
    %28 = vector.load %arg6[%c8, %c0_14, %c0_15] : memref<9x1x512xf32, #tpu.memory_space<vmem>>, vector<1x1x512xf32>
    %29 = vector.shape_cast %28 : vector<1x1x512xf32> to vector<1x512xf32>
    %30 = vector.shape_cast %29 : vector<1x512xf32> to vector<1x512xf32>
    %31 = vector.broadcast %30 : vector<1x512xf32> to vector<4x512xf32>
    %c0_16 = arith.constant 0 : index
    %c0_17 = arith.constant 0 : index
    %c0_18 = arith.constant 0 : index
    %32 = vector.load %arg1[%c0_16, %c0_17, %c0_18] : memref<1x8x512xf32, #tpu.memory_space<vmem>>, vector<1x8x512xf32>
    %33 = vector.shape_cast %32 : vector<1x8x512xf32> to vector<8x512xf32>
    %c0_19 = arith.constant 0 : index
    %c0_20 = arith.constant 0 : index
    %c0_21 = arith.constant 0 : index
    %34 = vector.load %arg2[%c0_19, %c0_20, %c0_21] : memref<2x4x8xf32, #tpu.memory_space<vmem>>, vector<1x4x8xf32>
    %35 = vector.shape_cast %34 : vector<1x4x8xf32> to vector<4x8xf32>
    %cst = arith.constant dense<0.000000e+00> : vector<4x512xf32>
    %36 = tpu.matmul %35, %33, %cst {dimension_numbers = #tpu.dot_dimension_numbers<[1], [0], [0], [1], [0, 0, 1, 1], [], []>} : vector<4x8xf32>, vector<8x512xf32>, vector<4x512xf32> -> vector<4x512xf32>
    %c0_22 = arith.constant 0 : index
    %c0_23 = arith.constant 0 : index
    %c0_24 = arith.constant 0 : index
    %37 = vector.load %arg3[%c0_22, %c0_23, %c0_24] : memref<2x4x1xf32, #tpu.memory_space<vmem>>, vector<1x4x1xf32>
    %38 = vector.shape_cast %37 : vector<1x4x1xf32> to vector<4x1xf32>
    %39 = vector.broadcast %38 : vector<4x1xf32> to vector<4x512xf32>
    %40 = arith.addf %36, %39 : vector<4x512xf32>
    %cst_25 = arith.constant 1.000000e-01 : f32
    %41 = vector.broadcast %cst_25 : f32 to vector<4x512xf32>
    %42 = arith.mulf %41, %40 : vector<4x512xf32>
    %43 = arith.maximumf %40, %42 : vector<4x512xf32>
    %c17_i32 = arith.constant 17 : i32
    %44 = tpu.dynamic_rotate %43 by %c17_i32 dim 1 : vector<4x512xf32>, i32 -> vector<4x512xf32>
    %45 = arith.mulf %44, %3 : vector<4x512xf32>
    %c0_26 = arith.constant 0 : index
    %c0_27 = arith.constant 0 : index
    %46 = vector.load %arg8[%c0_26, %c0_27] : memref<36x512xf32, #tpu.memory_space<vmem>>, vector<4x512xf32>
    tpu.vector_store %arg8[%c0_26, %c0_27], %45 {strides = array<i32>} : memref<36x512xf32, #tpu.memory_space<vmem>>, vector<4x512xf32>,
    %c16_i32 = arith.constant 16 : i32
    %47 = tpu.dynamic_rotate %43 by %c16_i32 dim 1 : vector<4x512xf32>, i32 -> vector<4x512xf32>
    %48 = arith.mulf %47, %7 : vector<4x512xf32>
    %c4 = arith.constant 4 : index
    %c0_28 = arith.constant 0 : index
    %49 = vector.load %arg8[%c4, %c0_28] : memref<36x512xf32, #tpu.memory_space<vmem>>, vector<4x512xf32>
    tpu.vector_store %arg8[%c4, %c0_28], %48 {strides = array<i32>} : memref<36x512xf32, #tpu.memory_space<vmem>>, vector<4x512xf32>,
    %c15_i32 = arith.constant 15 : i32
    %50 = tpu.dynamic_rotate %43 by %c15_i32 dim 1 : vector<4x512xf32>, i32 -> vector<4x512xf32>
    %51 = arith.mulf %50, %11 : vector<4x512xf32>
    %c8_29 = arith.constant 8 : index
    %c0_30 = arith.constant 0 : index
    %52 = vector.load %arg8[%c8_29, %c0_30] : memref<36x512xf32, #tpu.memory_space<vmem>>, vector<4x512xf32>
    tpu.vector_store %arg8[%c8_29, %c0_30], %51 {strides = array<i32>} : memref<36x512xf32, #tpu.memory_space<vmem>>, vector<4x512xf32>,
    %c1_i32 = arith.constant 1 : i32
    %53 = tpu.dynamic_rotate %43 by %c1_i32 dim 1 : vector<4x512xf32>, i32 -> vector<4x512xf32>
    %54 = arith.mulf %53, %15 : vector<4x512xf32>
    %c12 = arith.constant 12 : index
    %c0_31 = arith.constant 0 : index
    %55 = vector.load %arg8[%c12, %c0_31] : memref<36x512xf32, #tpu.memory_space<vmem>>, vector<4x512xf32>
    tpu.vector_store %arg8[%c12, %c0_31], %54 {strides = array<i32>} : memref<36x512xf32, #tpu.memory_space<vmem>>, vector<4x512xf32>,
    %c16 = arith.constant 16 : index
    %c0_32 = arith.constant 0 : index
    %56 = vector.load %arg8[%c16, %c0_32] : memref<36x512xf32, #tpu.memory_space<vmem>>, vector<4x512xf32>
    tpu.vector_store %arg8[%c16, %c0_32], %43 {strides = array<i32>} : memref<36x512xf32, #tpu.memory_space<vmem>>, vector<4x512xf32>,
    %c511_i32 = arith.constant 511 : i32
    %57 = tpu.dynamic_rotate %43 by %c511_i32 dim 1 : vector<4x512xf32>, i32 -> vector<4x512xf32>
    %58 = arith.mulf %57, %19 : vector<4x512xf32>
    %c20 = arith.constant 20 : index
    %c0_33 = arith.constant 0 : index
    %59 = vector.load %arg8[%c20, %c0_33] : memref<36x512xf32, #tpu.memory_space<vmem>>, vector<4x512xf32>
    tpu.vector_store %arg8[%c20, %c0_33], %58 {strides = array<i32>} : memref<36x512xf32, #tpu.memory_space<vmem>>, vector<4x512xf32>,
    %c497_i32 = arith.constant 497 : i32
    %60 = tpu.dynamic_rotate %43 by %c497_i32 dim 1 : vector<4x512xf32>, i32 -> vector<4x512xf32>
    %61 = arith.mulf %60, %23 : vector<4x512xf32>
    %c24 = arith.constant 24 : index
    %c0_34 = arith.constant 0 : index
    %62 = vector.load %arg8[%c24, %c0_34] : memref<36x512xf32, #tpu.memory_space<vmem>>, vector<4x512xf32>
    tpu.vector_store %arg8[%c24, %c0_34], %61 {strides = array<i32>} : memref<36x512xf32, #tpu.memory_space<vmem>>, vector<4x512xf32>,
    %c496_i32 = arith.constant 496 : i32
    %63 = tpu.dynamic_rotate %43 by %c496_i32 dim 1 : vector<4x512xf32>, i32 -> vector<4x512xf32>
    %64 = arith.mulf %63, %27 : vector<4x512xf32>
    %c28 = arith.constant 28 : index
    %c0_35 = arith.constant 0 : index
    %65 = vector.load %arg8[%c28, %c0_35] : memref<36x512xf32, #tpu.memory_space<vmem>>, vector<4x512xf32>
    tpu.vector_store %arg8[%c28, %c0_35], %64 {strides = array<i32>} : memref<36x512xf32, #tpu.memory_space<vmem>>, vector<4x512xf32>,
    %c495_i32 = arith.constant 495 : i32
    %66 = tpu.dynamic_rotate %43 by %c495_i32 dim 1 : vector<4x512xf32>, i32 -> vector<4x512xf32>
    %67 = arith.mulf %66, %31 : vector<4x512xf32>
    %c32 = arith.constant 32 : index
    %c0_36 = arith.constant 0 : index
    %68 = vector.load %arg8[%c32, %c0_36] : memref<36x512xf32, #tpu.memory_space<vmem>>, vector<4x512xf32>
    tpu.vector_store %arg8[%c32, %c0_36], %67 {strides = array<i32>} : memref<36x512xf32, #tpu.memory_space<vmem>>, vector<4x512xf32>,
    %c0_37 = arith.constant 0 : index
    %c0_38 = arith.constant 0 : index
    %c0_39 = arith.constant 0 : index
    %69 = vector.load %arg4[%c0_37, %c0_38, %c0_39] : memref<2x8x36xf32, #tpu.memory_space<vmem>>, vector<1x8x36xf32>
    %70 = vector.shape_cast %69 : vector<1x8x36xf32> to vector<8x36xf32>
    %c0_40 = arith.constant 0 : index
    %c0_41 = arith.constant 0 : index
    %71 = vector.load %arg8[%c0_40, %c0_41] : memref<36x512xf32, #tpu.memory_space<vmem>>, vector<36x512xf32>
    %cst_42 = arith.constant dense<0.000000e+00> : vector<8x512xf32>
    %72 = tpu.matmul %70, %71, %cst_42 {dimension_numbers = #tpu.dot_dimension_numbers<[1], [0], [0], [1], [0, 0, 1, 1], [], []>} : vector<8x36xf32>, vector<36x512xf32>, vector<8x512xf32> -> vector<8x512xf32>
    %c0_43 = arith.constant 0 : index
    %c0_44 = arith.constant 0 : index
    %c0_45 = arith.constant 0 : index
    %73 = vector.load %arg5[%c0_43, %c0_44, %c0_45] : memref<2x8x1xf32, #tpu.memory_space<vmem>>, vector<1x8x1xf32>
    %74 = vector.shape_cast %73 : vector<1x8x1xf32> to vector<8x1xf32>
    %75 = vector.broadcast %74 : vector<8x1xf32> to vector<8x512xf32>
    %76 = arith.addf %72, %75 : vector<8x512xf32>
    %cst_46 = arith.constant 1.000000e-01 : f32
    %77 = vector.broadcast %cst_46 : f32 to vector<8x512xf32>
    %78 = arith.mulf %77, %76 : vector<8x512xf32>
    %79 = arith.maximumf %76, %78 : vector<8x512xf32>
    %80 = arith.addf %79, %33 : vector<8x512xf32>
    %c1_47 = arith.constant 1 : index
    %c0_48 = arith.constant 0 : index
    %c0_49 = arith.constant 0 : index
    %81 = vector.load %arg2[%c1_47, %c0_48, %c0_49] : memref<2x4x8xf32, #tpu.memory_space<vmem>>, vector<1x4x8xf32>
    %82 = vector.shape_cast %81 : vector<1x4x8xf32> to vector<4x8xf32>
    %cst_50 = arith.constant dense<0.000000e+00> : vector<4x512xf32>
    %83 = tpu.matmul %82, %80, %cst_50 {dimension_numbers = #tpu.dot_dimension_numbers<[1], [0], [0], [1], [0, 0, 1, 1], [], []>} : vector<4x8xf32>, vector<8x512xf32>, vector<4x512xf32> -> vector<4x512xf32>
    %c1_51 = arith.constant 1 : index
    %c0_52 = arith.constant 0 : index
    %c0_53 = arith.constant 0 : index
    %84 = vector.load %arg3[%c1_51, %c0_52, %c0_53] : memref<2x4x1xf32, #tpu.memory_space<vmem>>, vector<1x4x1xf32>
    %85 = vector.shape_cast %84 : vector<1x4x1xf32> to vector<4x1xf32>
    %86 = vector.broadcast %85 : vector<4x1xf32> to vector<4x512xf32>
    %87 = arith.addf %83, %86 : vector<4x512xf32>
    %cst_54 = arith.constant 1.000000e-01 : f32
    %88 = vector.broadcast %cst_54 : f32 to vector<4x512xf32>
    %89 = arith.mulf %88, %87 : vector<4x512xf32>
    %90 = arith.maximumf %87, %89 : vector<4x512xf32>
    %c17_i32_55 = arith.constant 17 : i32
    %91 = tpu.dynamic_rotate %90 by %c17_i32_55 dim 1 : vector<4x512xf32>, i32 -> vector<4x512xf32>
    %92 = arith.mulf %91, %3 : vector<4x512xf32>
    %c0_56 = arith.constant 0 : index
    %c0_57 = arith.constant 0 : index
    %93 = vector.load %arg8[%c0_56, %c0_57] : memref<36x512xf32, #tpu.memory_space<vmem>>, vector<4x512xf32>
    tpu.vector_store %arg8[%c0_56, %c0_57], %92 {strides = array<i32>} : memref<36x512xf32, #tpu.memory_space<vmem>>, vector<4x512xf32>,
    %c16_i32_58 = arith.constant 16 : i32
    %94 = tpu.dynamic_rotate %90 by %c16_i32_58 dim 1 : vector<4x512xf32>, i32 -> vector<4x512xf32>
    %95 = arith.mulf %94, %7 : vector<4x512xf32>
    %c4_59 = arith.constant 4 : index
    %c0_60 = arith.constant 0 : index
    %96 = vector.load %arg8[%c4_59, %c0_60] : memref<36x512xf32, #tpu.memory_space<vmem>>, vector<4x512xf32>
    tpu.vector_store %arg8[%c4_59, %c0_60], %95 {strides = array<i32>} : memref<36x512xf32, #tpu.memory_space<vmem>>, vector<4x512xf32>,
    %c15_i32_61 = arith.constant 15 : i32
    %97 = tpu.dynamic_rotate %90 by %c15_i32_61 dim 1 : vector<4x512xf32>, i32 -> vector<4x512xf32>
    %98 = arith.mulf %97, %11 : vector<4x512xf32>
    %c8_62 = arith.constant 8 : index
    %c0_63 = arith.constant 0 : index
    %99 = vector.load %arg8[%c8_62, %c0_63] : memref<36x512xf32, #tpu.memory_space<vmem>>, vector<4x512xf32>
    tpu.vector_store %arg8[%c8_62, %c0_63], %98 {strides = array<i32>} : memref<36x512xf32, #tpu.memory_space<vmem>>, vector<4x512xf32>,
    %c1_i32_64 = arith.constant 1 : i32
    %100 = tpu.dynamic_rotate %90 by %c1_i32_64 dim 1 : vector<4x512xf32>, i32 -> vector<4x512xf32>
    %101 = arith.mulf %100, %15 : vector<4x512xf32>
    %c12_65 = arith.constant 12 : index
    %c0_66 = arith.constant 0 : index
    %102 = vector.load %arg8[%c12_65, %c0_66] : memref<36x512xf32, #tpu.memory_space<vmem>>, vector<4x512xf32>
    tpu.vector_store %arg8[%c12_65, %c0_66], %101 {strides = array<i32>} : memref<36x512xf32, #tpu.memory_space<vmem>>, vector<4x512xf32>,
    %c16_67 = arith.constant 16 : index
    %c0_68 = arith.constant 0 : index
    %103 = vector.load %arg8[%c16_67, %c0_68] : memref<36x512xf32, #tpu.memory_space<vmem>>, vector<4x512xf32>
    tpu.vector_store %arg8[%c16_67, %c0_68], %90 {strides = array<i32>} : memref<36x512xf32, #tpu.memory_space<vmem>>, vector<4x512xf32>,
    %c511_i32_69 = arith.constant 511 : i32
    %104 = tpu.dynamic_rotate %90 by %c511_i32_69 dim 1 : vector<4x512xf32>, i32 -> vector<4x512xf32>
    %105 = arith.mulf %104, %19 : vector<4x512xf32>
    %c20_70 = arith.constant 20 : index
    %c0_71 = arith.constant 0 : index
    %106 = vector.load %arg8[%c20_70, %c0_71] : memref<36x512xf32, #tpu.memory_space<vmem>>, vector<4x512xf32>
    tpu.vector_store %arg8[%c20_70, %c0_71], %105 {strides = array<i32>} : memref<36x512xf32, #tpu.memory_space<vmem>>, vector<4x512xf32>,
    %c497_i32_72 = arith.constant 497 : i32
    %107 = tpu.dynamic_rotate %90 by %c497_i32_72 dim 1 : vector<4x512xf32>, i32 -> vector<4x512xf32>
    %108 = arith.mulf %107, %23 : vector<4x512xf32>
    %c24_73 = arith.constant 24 : index
    %c0_74 = arith.constant 0 : index
    %109 = vector.load %arg8[%c24_73, %c0_74] : memref<36x512xf32, #tpu.memory_space<vmem>>, vector<4x512xf32>
    tpu.vector_store %arg8[%c24_73, %c0_74], %108 {strides = array<i32>} : memref<36x512xf32, #tpu.memory_space<vmem>>, vector<4x512xf32>,
    %c496_i32_75 = arith.constant 496 : i32
    %110 = tpu.dynamic_rotate %90 by %c496_i32_75 dim 1 : vector<4x512xf32>, i32 -> vector<4x512xf32>
    %111 = arith.mulf %110, %27 : vector<4x512xf32>
    %c28_76 = arith.constant 28 : index
    %c0_77 = arith.constant 0 : index
    %112 = vector.load %arg8[%c28_76, %c0_77] : memref<36x512xf32, #tpu.memory_space<vmem>>, vector<4x512xf32>
    tpu.vector_store %arg8[%c28_76, %c0_77], %111 {strides = array<i32>} : memref<36x512xf32, #tpu.memory_space<vmem>>, vector<4x512xf32>,
    %c495_i32_78 = arith.constant 495 : i32
    %113 = tpu.dynamic_rotate %90 by %c495_i32_78 dim 1 : vector<4x512xf32>, i32 -> vector<4x512xf32>
    %114 = arith.mulf %113, %31 : vector<4x512xf32>
    %c32_79 = arith.constant 32 : index
    %c0_80 = arith.constant 0 : index
    %115 = vector.load %arg8[%c32_79, %c0_80] : memref<36x512xf32, #tpu.memory_space<vmem>>, vector<4x512xf32>
    tpu.vector_store %arg8[%c32_79, %c0_80], %114 {strides = array<i32>} : memref<36x512xf32, #tpu.memory_space<vmem>>, vector<4x512xf32>,
    %c1_81 = arith.constant 1 : index
    %c0_82 = arith.constant 0 : index
    %c0_83 = arith.constant 0 : index
    %116 = vector.load %arg4[%c1_81, %c0_82, %c0_83] : memref<2x8x36xf32, #tpu.memory_space<vmem>>, vector<1x8x36xf32>
    %117 = vector.shape_cast %116 : vector<1x8x36xf32> to vector<8x36xf32>
    %c0_84 = arith.constant 0 : index
    %c0_85 = arith.constant 0 : index
    %118 = vector.load %arg8[%c0_84, %c0_85] : memref<36x512xf32, #tpu.memory_space<vmem>>, vector<36x512xf32>
    %cst_86 = arith.constant dense<0.000000e+00> : vector<8x512xf32>
    %119 = tpu.matmul %117, %118, %cst_86 {dimension_numbers = #tpu.dot_dimension_numbers<[1], [0], [0], [1], [0, 0, 1, 1], [], []>} : vector<8x36xf32>, vector<36x512xf32>, vector<8x512xf32> -> vector<8x512xf32>
    %c1_87 = arith.constant 1 : index
    %c0_88 = arith.constant 0 : index
    %c0_89 = arith.constant 0 : index
    %120 = vector.load %arg5[%c1_87, %c0_88, %c0_89] : memref<2x8x1xf32, #tpu.memory_space<vmem>>, vector<1x8x1xf32>
    %121 = vector.shape_cast %120 : vector<1x8x1xf32> to vector<8x1xf32>
    %122 = vector.broadcast %121 : vector<8x1xf32> to vector<8x512xf32>
    %123 = arith.addf %119, %122 : vector<8x512xf32>
    %cst_90 = arith.constant 1.000000e-01 : f32
    %124 = vector.broadcast %cst_90 : f32 to vector<8x512xf32>
    %125 = arith.mulf %124, %123 : vector<8x512xf32>
    %126 = arith.maximumf %123, %125 : vector<8x512xf32>
    %127 = arith.addf %126, %80 : vector<8x512xf32>
    %c0_91 = arith.constant 0 : index
    %c0_92 = arith.constant 0 : index
    %c0_93 = arith.constant 0 : index
    %128 = vector.load %arg7[%c0_91, %c0_92, %c0_93] : memref<1x8x512xf32, #tpu.memory_space<vmem>>, vector<1x8x512xf32>
    %129 = vector.shape_cast %128 : vector<1x8x512xf32> to vector<8x512xf32>
    %130 = vector.shape_cast %127 : vector<8x512xf32> to vector<1x8x512xf32>
    tpu.vector_store %arg7[%c0_91, %c0_92, %c0_93], %130 {strides = array<i32>} : memref<1x8x512xf32, #tpu.memory_space<vmem>>, vector<1x8x512xf32>,
    return
  }
  func.func @transform_0(%arg0: i32) -> (i32, i32, i32) {
    %c0_i32 = arith.constant 0 : i32
    %c0_i32_0 = arith.constant 0 : i32
    %c0_i32_1 = arith.constant 0 : i32
    return %arg0, %c0_i32, %c0_i32_0 : i32, i32, i32
  }
  func.func @transform_1(%arg0: i32) -> (i32, i32, i32) {
    %c0_i32 = arith.constant 0 : i32
    %c0_i32_0 = arith.constant 0 : i32
    %c0_i32_1 = arith.constant 0 : i32
    %c0_i32_2 = arith.constant 0 : i32
    return %c0_i32, %c0_i32_0, %c0_i32_1 : i32, i32, i32
  }
  func.func @transform_2(%arg0: i32) -> (i32, i32, i32) {
    %c0_i32 = arith.constant 0 : i32
    %c0_i32_0 = arith.constant 0 : i32
    %c0_i32_1 = arith.constant 0 : i32
    %c0_i32_2 = arith.constant 0 : i32
    return %c0_i32, %c0_i32_0, %c0_i32_1 : i32, i32, i32
  }
  func.func @transform_3(%arg0: i32) -> (i32, i32, i32) {
    %c0_i32 = arith.constant 0 : i32
    %c0_i32_0 = arith.constant 0 : i32
    %c0_i32_1 = arith.constant 0 : i32
    %c0_i32_2 = arith.constant 0 : i32
    return %c0_i32, %c0_i32_0, %c0_i32_1 : i32, i32, i32
  }
  func.func @transform_4(%arg0: i32) -> (i32, i32, i32) {
    %c0_i32 = arith.constant 0 : i32
    %c0_i32_0 = arith.constant 0 : i32
    %c0_i32_1 = arith.constant 0 : i32
    %c0_i32_2 = arith.constant 0 : i32
    return %c0_i32, %c0_i32_0, %c0_i32_1 : i32, i32, i32
  }
  func.func @transform_5(%arg0: i32) -> (i32, i32, i32) {
    %c0_i32 = arith.constant 0 : i32
    %c0_i32_0 = arith.constant 0 : i32
    %c0_i32_1 = arith.constant 0 : i32
    %c0_i32_2 = arith.constant 0 : i32
    return %c0_i32, %c0_i32_0, %c0_i32_1 : i32, i32, i32
  }
  func.func @transform_6(%arg0: i32) -> (i32, i32, i32) {
    %c0_i32 = arith.constant 0 : i32
    %c0_i32_0 = arith.constant 0 : i32
    %c0_i32_1 = arith.constant 0 : i32
    return %arg0, %c0_i32, %c0_i32_0 : i32, i32, i32
  }
}

</mosaic_0001>

<bundles_post_ra>
// kernel: resblock_forward.1
= control target key start
LH: loop header
LB: loop body
LE: loop exit
PB: predicated region body
PF: predicated region fallthrough
CT: control target
= control target key end

     0   :  { %s1764_s21 = smov 0   ;;  %s2276_s0 = inlined_call_operand.vmem [shape: f32[2,8,512], index: 0, kind: input, shape index: {}]   ;;  %s2277_s1 = inlined_call_operand.vmem [shape: f32[2,4,8], index: 1, kind: input, shape index: {}]   ;;  %s2278_s2 = inlined_call_operand.vmem [shape: f32[2,4,1], index: 2, kind: input, shape index: {}]   ;;  %s2279_s3 = inlined_call_operand.vmem [shape: f32[2,8,36], index: 3, kind: input, shape index: {}]   ;;  %s2280_s4 = inlined_call_operand.vmem [shape: f32[2,8,1], index: 4, kind: input, shape index: {}]   ;;  %s2281_s5 = inlined_call_operand.vmem [shape: f32[9,1,512], index: 5, kind: input, shape index: {}]   ;;  %s2282_s6 = inlined_call_operand.vmem [shape: f32[2,8,512], index: 6, kind: output, shape index: {}]  }
   0x1 LB: > { %s1651_s22 = sadd.s32 4294967295, %s1717_s21   ;;  %p1655_p0 = scmp.ge.s32.totalorder %s1717_s21, 1  ;;  %s1717_s21 = sphi %s1764_s21, %s16_s21  }
   0x2   : > { %p212_p1 = scmp.lt.s32.totalorder %s1717_s21, 3 }
   0x4   : > { %p213_p2 = pnand %p1655_p0, %p212_p1 }
   0x5   : > { %p242_p3 = scmp.lt.s32.totalorder (!%p213_p2), %s1651_s22, 1  ;;  %s1721_s7 = smov (!%p213_p2), 112  }
   0x6   : > { %216 = sbr.rel (%p213_p2) target bundleno = 1202 (0x4b2), region = 44  ;;  %s1722_s8 = smov (!%p213_p2), 111  }
   0x7   : > { %s1723_s9 = smov (!%p213_p2), 127   ;;  %s1724_s10 = smov (!%p213_p2), 113  }
   0x8   : > { %s1725_s11 = smov (!%p213_p2), 1   ;;  %s1726_s12 = smov (!%p213_p2), 16  }
   0x9   : > { %s1727_s13 = smov (!%p213_p2), 15   ;;  %s1728_s14 = smov (!%p213_p2), 17  }
   0xb   : > { %v1719_v0 = vmov 0.0   ;;  %v440_v1 = vld [vmem:[%s2278_s2] sm:$0xf]  ;;  %s2284_s22 = smov (!%p242_p3, %s1651_s22), 1  ;;  %v1720_v2 = vmov 0   ;;  %vm446_vm0 = vcmask 64512   ;;  %v254_v27 = vlaneseq }
   0xc   : > { %514 = vmatprep.mubr.f32.mxu0 %v1719_v0  ;;  %585 = vmatprep.mubr.f32.mxu1 %v1719_v0  ;;  %s1689_s25 = sshll.u32 %s2284_s22, 5  ;;  %v439_v3 = vld [vmem:[%s2277_s1] sm:$0xf]  ;;  %v1676_v25 = vld [vmem:[%s2278_s2 + $0x4] sm:$0xf]  ;;  %vm853_vm4 = vcmask 1043456  }
   0xd   : > { %1709 = vset.pattern.permute.xlu0 %v1720_v2  ;;  %1710 = vset.pattern.permute.xlu1 %v1720_v2  ;;  %s246_s28 = scalar_lea.vmem %s2276_s0, %s1689_s25  ;;  %v843_v26 = vld [vmem:[%s2280_s4] sm:$0xff]  ;;  %v255_v28 = vshrl.u32 %v254_v27, 7  ;;  %v1846_v31 = vand.u32 127, %v254_v27  ;;  %v1851_v32 = vld [vmem:[%s2281_s5 + $0x1c] sm:$0xf]  ;;  %vm849_vm10 = vcmask 293888  }
   0xe   : > { %443 = vperm.xlu0 %1709, %v440_v1   ;;  %v1788_v4 = vld [vmem:[%s246_s28 + $0x8] sm:$0xff]  ;;  %v1790_v5 = vld [vmem:[%s246_s28 + $0x18] sm:$0xff]  ;;  %v1792_v6 = vld [vmem:[%s246_s28] sm:$0xff] }
   0xf   : > { %480 = vmatprep.subr.mxu0 %v1788_v4  ;;  %551 = vmatprep.subr.mxu1 %v1790_v5  ;;  %v1796_v7 = vld [vmem:[%s246_s28 + $0x10] sm:$0xff]  ;;  %v1842_v29 = vsub.s32 2, %v255_v28  ;;  %v1844_v30 = vsub.s32 3, %v255_v28  ;;  %v1857_v35 = vsub.s32 0, %v255_v28  ;;  %vm776_vm1 = vcmp.lt.s32.totalorder %v1846_v31, 112 }
  0x10   : > { %481 = vmatpush1.msra.mxu0 %v1792_v6  ;;  %552 = vmatpush1.msra.mxu1 %v1796_v7  ;;  %v1868_v38 = vsub.s32 1, %v255_v28  ;;  %v1666_v39 = vld [vmem:[%s2281_s5 + $0x20] sm:$0xf]  ;;  %vm809_vm2 = vcmp.lt.s32.totalorder %v1846_v31, 111  ;;  %v1663_v58 = vld [vmem:[%s2281_s5 + $0x14] sm:$0xf] }
  0x11   : > { %1667 = vmatmul.mubr.msk.f32.vlgmr.msra.gmra.mxu0 %vm446_vm0, %v439_v3  ;;  %1668 = vmatmul.mubr.msk.f32.vlgmr.msra.gmra.mxu1 %vm446_vm0, %v439_v3  ;;  %v1861_v36 = vrot.slane %v1851_v32, %v1842_v29  ;;  %v1865_v37 = vrot.slane %v1851_v32, %v1844_v30  ;;  %v1880_v44 = vrot.slane %v1666_v39, %v1857_v35  ;;  %vm722_vm3 = vcmp.lt.s32.totalorder %v1846_v31, 127 }
  0x12   : > { %930 = vmatprep.mubr.f32.mxu0 %v1719_v0  ;;  %1001 = vmatprep.mubr.f32.mxu1 %v1719_v0  ;;  %v1885_v47 = vrot.slane %v1666_v39, %v1868_v38  ;;  %v1895_v56 = vrot.slane %v1666_v39, %v1842_v29  ;;  %v1898_v57 = vrot.slane %v1666_v39, %v1844_v30  ;;  %vm755_vm5 = vcmp.lt.s32.totalorder %v1846_v31, 113 }
  0x13   : > { %v1908_v63 = vrot.slane %v1663_v58, %v1857_v35  ;;  %v1913_v3 = vrot.slane %v1663_v58, %v1868_v38  ;;  %vm685_vm6 = vcmp.lt.s32.totalorder %v1846_v31, 1  ;;  %vm631_vm7 = vcmp.lt.s32.totalorder %v1846_v31, 16 }
  0x14   : > { %vm664_vm8 = vcmp.lt.s32.totalorder %v1846_v31, 15  ;;  %vm610_vm9 = vcmp.lt.s32.totalorder %v1846_v31, 17  ;;  %v1679_v31 = vld [vmem:[%s2279_s3 + $0x8] sm:$0xff] }
  0x89   : > { %v444_v8 = vpop.permute.xlu0 %443 }
  0xd1   : > { %v516_v9 = vpop.f32.mrf.mxu0  ;;  %v587_v10 = vpop.f32.mrf.mxu1 }
  0xd2   : > { %v517_v11 = vadd.f32 %v516_v9, %v444_v8  ;;  %v588_v12 = vadd.f32 %v587_v10, %v444_v8 }
  0xd3   : > { %v518_v13 = vpop.f32.mrf.mxu0  ;;  %v589_v14 = vpop.f32.mrf.mxu1 }
  0xd4   : > { %v592_v15 = vmul.f32 0.1, %v517_v11  ;;  %v594_v16 = vmul.f32 0.1, %v588_v12  ;;  %v519_v17 = vadd.f32 %v518_v13, %v444_v8  ;;  %v590_v18 = vadd.f32 %v589_v14, %v444_v8 }
  0xd5   : > { %v1923_v14 = vrot.slane %v1663_v58, %v1842_v29 }
  0xd6   : > { %v596_v19 = vmax.f32 %v517_v11, %v592_v15  ;;  %v598_v20 = vmax.f32 %v588_v12, %v594_v16  ;;  %v593_v21 = vmul.f32 0.1, %v519_v17  ;;  %v595_v22 = vmul.f32 0.1, %v590_v18  ;;  %v1664_v16 = vld [vmem:[%s2281_s5 + $0x18] sm:$0xf] }
  0xd7   : > { %v1926_v15 = vrot.slane %v1663_v58, %v1844_v30  ;;  %v1943_v28 = vrot.slane %v1664_v16, %v1868_v38 }
  0xd8   : > { %710 = vst [vmem:[#allocation2 + $0x8] sm:$0xf] %v596_v19  ;;  %712 = vst [vmem:[#allocation2 + $0x28] sm:$0xf] %v598_v20  ;;  %v597_v23 = vmax.f32 %v519_v17, %v593_v21  ;;  %v599_v24 = vmax.f32 %v590_v18, %v595_v22  ;;  %772 = vrot.lane.b32.xlu1 %v598_v20, %s1721_s7  ;;  %768 = vrot.lane.b32.xlu0 %v596_v19, %s1721_s7 }
  0xda   : > { %711 = vst [vmem:[#allocation2 + $0x88] sm:$0xf] %v597_v23  ;;  %713 = vst [vmem:[#allocation2 + $0x40] sm:$0xf] %v599_v24 }
  0xdc   : > { %801 = vrot.lane.b32.xlu1 %v596_v19, %s1722_s8  ;;  %774 = vrot.lane.b32.xlu0 %v599_v24, %s1721_s7 }
  0xe0   : > { %805 = vrot.lane.b32.xlu1 %v598_v20, %s1722_s8  ;;  %803 = vrot.lane.b32.xlu0 %v597_v23, %s1722_s8 }
  0xe4   : > { %714 = vrot.lane.b32.xlu1 %v596_v19, %s1723_s9  ;;  %807 = vrot.lane.b32.xlu0 %v599_v24, %s1722_s8 }
  0xe8   : > { %718 = vrot.lane.b32.xlu1 %v598_v20, %s1723_s9  ;;  %716 = vrot.lane.b32.xlu0 %v597_v23, %s1723_s9 }
  0xec   : > { %747 = vrot.lane.b32.xlu1 %v596_v19, %s1724_s10  ;;  %720 = vrot.lane.b32.xlu0 %v599_v24, %s1723_s9 }
  0xf0   : > { %751 = vrot.lane.b32.xlu1 %v598_v20, %s1724_s10  ;;  %749 = vrot.lane.b32.xlu0 %v597_v23, %s1724_s10 }
  0xf4   : > { %677 = vrot.lane.b32.xlu1 %v596_v19, %s1725_s11  ;;  %753 = vrot.lane.b32.xlu0 %v599_v24, %s1724_s10 }
  0xf8   : > { %681 = vrot.lane.b32.xlu1 %v598_v20, %s1725_s11  ;;  %679 = vrot.lane.b32.xlu0 %v597_v23, %s1725_s11 }
  0xfc   : > { %623 = vrot.lane.b32.xlu1 %v596_v19, %s1726_s12  ;;  %683 = vrot.lane.b32.xlu0 %v599_v24, %s1725_s11 }
 0x100   : > { %627 = vrot.lane.b32.xlu1 %v598_v20, %s1726_s12  ;;  %625 = vrot.lane.b32.xlu0 %v597_v23, %s1726_s12 }
 0x104   : > { %656 = vrot.lane.b32.xlu1 %v596_v19, %s1727_s13  ;;  %629 = vrot.lane.b32.xlu0 %v599_v24, %s1726_s12 }
 0x108   : > { %660 = vrot.lane.b32.xlu1 %v598_v20, %s1727_s13  ;;  %658 = vrot.lane.b32.xlu0 %v597_v23, %s1727_s13 }
 0x10c   : > { %770 = vrot.lane.b32.xlu1 %v597_v23, %s1721_s7  ;;  %662 = vrot.lane.b32.xlu0 %v599_v24, %s1727_s13 }
 0x110   : > { %600 = vrot.lane.b32.xlu1 %v596_v19, %s1728_s14  ;;  %602 = vrot.lane.b32.xlu0 %v597_v23, %s1728_s14 }
 0x114   : > { %604 = vrot.lane.b32.xlu1 %v598_v20, %s1728_s14  ;;  %606 = vrot.lane.b32.xlu0 %v599_v24, %s1728_s14 }
 0x118   : > { %1026 = vperm.xlu0 %1709, %v1676_v25   ;;  %846 = vperm.xlu1 %1710, %v843_v26   ;;  %v1938_v25 = vrot.slane %v1664_v16, %v1857_v35 }
 0x14a   : > { %v1853_v33 = vpop.permute.xlu1 %772  ;;  %v1855_v34 = vpop.permute.xlu0 %768 }
 0x14e   : > { %v802_v40 = vpop.permute.xlu1 %801  ;;  %v775_v41 = vpop.permute.xlu0 %774 }
 0x14f   : > { %v777_v42 = vsel %vm776_vm1, %v1853_v33, %v775_v41  ;;  %v780_v43 = vsel %vm776_vm1, %v775_v41, %v1855_v34 }
 0x150   : > { %v783_v45 = vmul.f32 %v777_v42, %v1861_v36  ;;  %v784_v46 = vmul.f32 %v780_v43, %v1865_v37 }
 0x152   : > { %v791_v48 = vrot.slane %v783_v45, 4  ;;  %v792_v49 = vrot.slane %v784_v46, 4  ;;  %v806_v50 = vpop.permute.xlu1 %805  ;;  %v804_v51 = vpop.permute.xlu0 %803 }
 0x153   : > { %v811_v52 = vsel %vm809_vm2, %v804_v51, %v806_v50  ;;  %v812_v53 = vsel %vm809_vm2, %v802_v40, %v804_v51  ;;  %v1955_v51 = vrot.slane %v1664_v16, %v1842_v29 }
 0x154   : > { %799 = vst [vmem:[#allocation2 + $0x98] sm:$0xf0] %v791_v48  ;;  %800 = vst [vmem:[#allocation2 + $0x60] sm:$0xf0] %v792_v49  ;;  %v814_v54 = vmul.f32 %v812_v53, %v1880_v44  ;;  %v815_v55 = vmul.f32 %v811_v52, %v1885_v47  ;;  %v1958_v52 = vrot.slane %v1664_v16, %v1844_v30  ;;  %v1662_v53 = vld [vmem:[%s2281_s5 + $0xc] sm:$0xf] }
 0x155   : > { %v1986_v16 = vrot.slane %v1662_v53, %v1844_v30 }
 0x156   : > { %818 = vst [vmem:[#allocation2 + $0x20] sm:$0xf] %v814_v54  ;;  %819 = vst [vmem:[#allocation2 + $0x48] sm:$0xf] %v815_v55  ;;  %v715_v59 = vpop.permute.xlu1 %714  ;;  %v808_v60 = vpop.permute.xlu0 %807 }
 0x157   : > { %v810_v61 = vsel %vm809_vm2, %v806_v50, %v808_v60  ;;  %v813_v62 = vsel %vm809_vm2, %v808_v60, %v802_v40  ;;  %v1968_v60 = vrot.slane %v1662_v53, %v1868_v38 }
 0x158   : > { %v816_v1 = vmul.f32 %v810_v61, %v1895_v56  ;;  %v817_v2 = vmul.f32 %v813_v62, %v1898_v57 }
 0x15a   : > { %820 = vst [vmem:[#allocation2 + $0x70] sm:$0xf] %v816_v1  ;;  %821 = vst [vmem:[#allocation2 + $0x90] sm:$0xf] %v817_v2  ;;  %v719_v8 = vpop.permute.xlu1 %718  ;;  %v717_v9 = vpop.permute.xlu0 %716  ;;  %v1973_v1 = vrot.slane %v1662_v53, %v1842_v29 }
 0x15b   : > { %v724_v10 = vsel %vm722_vm3, %v717_v9, %v719_v8  ;;  %v725_v11 = vsel %vm722_vm3, %v715_v59, %v717_v9 }
 0x15c   : > { %v727_v12 = vmul.f32 %v725_v11, %v1908_v63  ;;  %v728_v13 = vmul.f32 %v724_v10, %v1913_v3 }
 0x15d   : > { %v840_v17 = vld [vmem:[#allocation2 + $0x48] sm:$0xf]  ;;  %v839_v18 = vld [vmem:[#allocation2 + $0x20] sm:$0xf] }
 0x15e   : > { %v735_v19 = vrot.slane %v727_v12, 4  ;;  %v736_v20 = vrot.slane %v728_v13, 4  ;;  %v748_v21 = vpop.permute.xlu1 %747  ;;  %1669 = vmatprep.subr.msk.mxu0 %vm853_vm4, %v840_v17  ;;  %v721_v22 = vpop.permute.xlu0 %720  ;;  %v1983_v13 = vrot.slane %v1662_v53, %v1857_v35  ;;  %v1660_v17 = vld [vmem:[%s2281_s5 + $0x4] sm:$0xf] }
 0x15f   : > { %v723_v23 = vsel %vm722_vm3, %v719_v8, %v721_v22  ;;  %v726_v24 = vsel %vm722_vm3, %v721_v22, %v715_v59  ;;  %1670 = vmatpush1.msk.msra.mxu0 %vm853_vm4, %v839_v18 }
 0x160   : > { %743 = vst [vmem:[#allocation2 + $0x8] sm:$0xf0] %v735_v19  ;;  %744 = vst [vmem:[#allocation2 + $0x88] sm:$0xf0] %v736_v20  ;;  %v729_v26 = vmul.f32 %v723_v23, %v1923_v14  ;;  %v730_v27 = vmul.f32 %v726_v24, %v1926_v15  ;;  %v1996_v24 = vrot.slane %v1660_v17, %v1868_v38 }
 0x161   : > { %v842_v39 = vld [vmem:[#allocation2 + $0x90] sm:$0xf] }
 0x162   : > { %v841_v40 = vld [vmem:[#allocation2 + $0x70] sm:$0xf]  ;;  %v737_v41 = vrot.slane %v729_v26, 4  ;;  %v738_v42 = vrot.slane %v730_v27, 4  ;;  %v752_v43 = vpop.permute.xlu1 %751  ;;  %1672 = vmatprep.subr.msk.mxu1 %vm853_vm4, %v842_v39  ;;  %v750_v45 = vpop.permute.xlu0 %749  ;;  %v2001_v39 = vrot.slane %v1660_v17, %v1842_v29 }
 0x163   : > { %v757_v46 = vsel %vm755_vm5, %v750_v45, %v752_v43  ;;  %v758_v48 = vsel %vm755_vm5, %v748_v21, %v750_v45  ;;  %1673 = vmatpush1.msk.msra.mxu1 %vm853_vm4, %v841_v40 }
 0x164   : > { %745 = vst [vmem:[#allocation2 + $0x28] sm:$0xf0] %v737_v41  ;;  %746 = vst [vmem:[#allocation2 + $0x40] sm:$0xf0] %v738_v42  ;;  %v760_v49 = vmul.f32 %v758_v48, %v1938_v25  ;;  %v761_v50 = vmul.f32 %v757_v46, %v1943_v28 }
 0x166   : > { %764 = vst [vmem:[#allocation2 + $0x58] sm:$0xf] %v760_v49  ;;  %765 = vst [vmem:[#allocation2 + $0x10] sm:$0xf] %v761_v50  ;;  %v678_v54 = vpop.permute.xlu1 %677  ;;  %v754_v55 = vpop.permute.xlu0 %753 }
 0x167   : > { %v756_v58 = vsel %vm755_vm5, %v752_v43, %v754_v55  ;;  %v759_v59 = vsel %vm755_vm5, %v754_v55, %v748_v21 }
 0x168   : > { %v762_v61 = vmul.f32 %v756_v58, %v1955_v51  ;;  %v763_v62 = vmul.f32 %v759_v59, %v1958_v52  ;;  %v2011_v58 = vrot.slane %v1660_v17, %v1857_v35  ;;  %v2014_v59 = vrot.slane %v1660_v17, %v1844_v30 }
 0x16a   : > { %766 = vst [vmem:[#allocation2 + $0x98] sm:$0xf] %v762_v61  ;;  %767 = vst [vmem:[#allocation2 + $0x60] sm:$0xf] %v763_v62  ;;  %v682_v2 = vpop.permute.xlu1 %681  ;;  %v680_v8 = vpop.permute.xlu0 %679  ;;  %v1661_v61 = vld [vmem:[%s2281_s5 + $0x8] sm:$0xf] }
 0x16b   : > { %v687_v9 = vsel %vm685_vm6, %v680_v8, %v682_v2  ;;  %v688_v10 = vsel %vm685_vm6, %v678_v54, %v680_v8  ;;  %v834_v50 = vld [vmem:[#allocation2 + $0x40] sm:$0xff]  ;;  %v833_v55 = vld [vmem:[#allocation2 + $0x28] sm:$0xff] }
 0x16c   : > { %v691_v11 = vmul.f32 %v688_v10, %v1968_v60  ;;  %v692_v12 = vmul.f32 %v687_v9, %v1973_v1 }
 0x16e   : > { %v699_v18 = vrot.slane %v691_v11, 4  ;;  %v700_v19 = vrot.slane %v692_v12, 4  ;;  %v624_v20 = vpop.permute.xlu1 %623  ;;  %v684_v21 = vpop.permute.xlu0 %683  ;;  %v2024_v12 = vrot.slane %v1661_v61, %v1868_v38 }
 0x16f   : > { %v686_v22 = vsel %vm685_vm6, %v682_v2, %v684_v21  ;;  %v689_v23 = vsel %vm685_vm6, %v684_v21, %v678_v54 }
 0x170   : > { %707 = vst [vmem:[#allocation2 + $0x68] sm:$0xf0] %v699_v18  ;;  %708 = vst [vmem:[#allocation2 + $0x78] sm:$0xf0] %v700_v19  ;;  %v690_v26 = vmul.f32 %v689_v23, %v1983_v13  ;;  %v693_v27 = vmul.f32 %v686_v22, %v1986_v16  ;;  %v2029_v19 = vrot.slane %v1661_v61, %v1842_v29 }
 0x171   : > { %v838_v40 = vld [vmem:[#allocation2 + $0x60] sm:$0xff]  ;;  %v837_v41 = vld [vmem:[#allocation2 + $0x98] sm:$0xff] }
 0x172   : > { %v698_v42 = vrot.slane %v690_v26, 4  ;;  %v701_v43 = vrot.slane %v693_v27, 4  ;;  %v628_v45 = vpop.permute.xlu1 %627  ;;  %961 = vmatprep.subr.mxu1 %v838_v40  ;;  %v626_v46 = vpop.permute.xlu0 %625  ;;  %v2038_v40 = vrot.slane %v1851_v32, %v1857_v35 }
 0x173   : > { %v633_v48 = vsel %vm631_vm7, %v626_v46, %v628_v45  ;;  %v634_v49 = vsel %vm631_vm7, %v624_v20, %v626_v46  ;;  %962 = vmatpush1.msra.mxu1 %v837_v41  ;;  %v2042_v41 = vrot.slane %v1851_v32, %v1868_v38  ;;  %v2050_v46 = vrot.slane %v1661_v61, %v1857_v35 }
 0x174   : > { %706 = vst [vmem:[#allocation2 + $0x30] sm:$0xf0] %v698_v42  ;;  %709 = vst [vmem:[#allocation2 + $0x80] sm:$0xf0] %v701_v43  ;;  %v637_v53 = vmul.f32 %v634_v49, %v1996_v24  ;;  %v638_v54 = vmul.f32 %v633_v48, %v2001_v39  ;;  %963 = vmatprep.subr.mxu1 %v834_v50  ;;  %v252_v42 = vld [vmem:[%s2281_s5] sm:$0xf]  ;;  %v2053_v48 = vrot.slane %v1661_v61, %v1844_v30 }
 0x175   : > { %964 = vmatpush1.msra.mxu1 %v833_v55  ;;  %v2056_v50 = vrot.slane %v252_v42, %v1868_v38 }
 0x176   : > { %v645_v62 = vrot.slane %v637_v53, 4  ;;  %v646_v2 = vrot.slane %v638_v54, 4  ;;  %v657_v8 = vpop.permute.xlu1 %656  ;;  %v630_v9 = vpop.permute.xlu0 %629 }
 0x177   : > { %v632_v10 = vsel %vm631_vm7, %v628_v45, %v630_v9  ;;  %v635_v11 = vsel %vm631_vm7, %v630_v9, %v624_v20 }
 0x178   : > { %653 = vst [vmem:[#allocation2 + $0x38] sm:$0xf0] %v645_v62  ;;  %654 = vst [vmem:[#allocation2 + $0x50] sm:$0xf0] %v646_v2  ;;  %v636_v17 = vmul.f32 %v635_v11, %v2011_v58  ;;  %v639_v18 = vmul.f32 %v632_v10, %v2014_v59 }
 0x17a   : > { %v644_v21 = vrot.slane %v636_v17, 4  ;;  %v647_v22 = vrot.slane %v639_v18, 4  ;;  %v661_v23 = vpop.permute.xlu1 %660  ;;  %v659_v26 = vpop.permute.xlu0 %658  ;;  %v2077_v18 = vrot.slane %v252_v42, %v1842_v29 }
 0x17b   : > { %v666_v20 = vsel %vm664_vm8, %v659_v26, %v661_v23  ;;  %v667_v27 = vsel %vm664_vm8, %v657_v8, %v659_v26 }
 0x17c   : > { %652 = vst [vmem:[#allocation2] sm:$0xf0] %v644_v21  ;;  %655 = vst [vmem:[#allocation2 + $0x18] sm:$0xf0] %v647_v22  ;;  %v670_v43 = vmul.f32 %v667_v27, %v2024_v12  ;;  %v671_v45 = vmul.f32 %v666_v20, %v2029_v19  ;;  %v2080_v21 = vrot.slane %v252_v42, %v1857_v35 }
 0x17d   : > { %v2083_v22 = vrot.slane %v252_v42, %v1844_v30 }
 0x17e   : > { %674 = vst [vmem:[#allocation2 + $0x68] sm:$0xf] %v670_v43  ;;  %675 = vst [vmem:[#allocation2 + $0x78] sm:$0xf] %v671_v45  ;;  %v771_v32 = vpop.permute.xlu1 %770  ;;  %v663_v49 = vpop.permute.xlu0 %662 }
 0x17f   : > { %v778_v53 = vsel %vm776_vm1, %v771_v32, %v1853_v33  ;;  %v779_v54 = vsel %vm776_vm1, %v1855_v34, %v771_v32  ;;  %v665_v55 = vsel %vm664_vm8, %v661_v23, %v663_v49  ;;  %v668_v61 = vsel %vm664_vm8, %v663_v49, %v657_v8 }
 0x180   : > { %v781_v62 = vmul.f32 %v779_v54, %v2038_v40  ;;  %v782_v38 = vmul.f32 %v778_v53, %v2042_v41  ;;  %v669_v2 = vmul.f32 %v668_v61, %v2050_v46  ;;  %v672_v9 = vmul.f32 %v665_v55, %v2053_v48  ;;  %v832_v53 = vld [vmem:[#allocation2 + $0x88] sm:$0xff] }
 0x181   : > { %v831_v54 = vld [vmem:[#allocation2 + $0x8] sm:$0xff] }
 0x182   : > { %v789_v10 = vrot.slane %v781_v62, 4  ;;  %v790_v33 = vrot.slane %v782_v38, 4  ;;  %673 = vst [vmem:[#allocation2 + $0x30] sm:$0xf] %v669_v2  ;;  %676 = vst [vmem:[#allocation2 + $0x80] sm:$0xf] %v672_v9  ;;  %v601_v11 = vpop.permute.xlu1 %600  ;;  %v603_v34 = vpop.permute.xlu0 %602 }
 0x183   : > { %v613_v17 = vsel %vm610_vm9, %v601_v11, %v603_v34  ;;  %v822_v38 = vld [vmem:[%s2279_s3] sm:$0xff] }
 0x184   : > { %797 = vst [vmem:[#allocation2 + $0x58] sm:$0xf0] %v789_v10  ;;  %798 = vst [vmem:[#allocation2 + $0x10] sm:$0xf0] %v790_v33  ;;  %v616_v8 = vmul.f32 %v613_v17, %v2056_v50 }
 0x185   : > { %v829_v42 = vld [vmem:[#allocation2 + $0x78] sm:$0xff]  ;;  %v828_v55 = vld [vmem:[#allocation2 + $0x68] sm:$0xff] }
 0x186   : > { %620 = vst [vmem:[#allocation2 + $0x38] sm:$0xf] %v616_v8  ;;  %v605_v23 = vpop.permute.xlu1 %604  ;;  %v607_v26 = vpop.permute.xlu0 %606 }
 0x187   : > { %v612_v20 = vsel %vm610_vm9, %v603_v34, %v605_v23  ;;  %v611_v27 = vsel %vm610_vm9, %v605_v23, %v607_v26  ;;  %v614_v43 = vsel %vm610_vm9, %v607_v26, %v601_v11 }
 0x188   : > { %v617_v29 = vmul.f32 %v612_v20, %v2077_v18  ;;  %v615_v35 = vmul.f32 %v614_v43, %v2080_v21  ;;  %v618_v45 = vmul.f32 %v611_v27, %v2083_v22 }
 0x189   : > { %v830_v30 = vld [vmem:[#allocation2 + $0x80] sm:$0xff]  ;;  %v827_v61 = vld [vmem:[#allocation2 + $0x30] sm:$0xff] }
 0x18a   : > { %621 = vst [vmem:[#allocation2 + $0x50] sm:$0xf] %v617_v29  ;;  %619 = vst [vmem:[#allocation2] sm:$0xf] %v615_v35  ;;  %965 = vmatprep.subr.mxu1 %v830_v30 }
 0x18b   : > { %622 = vst [vmem:[#allocation2 + $0x18] sm:$0xf] %v618_v45  ;;  %966 = vmatpush1.msra.mxu1 %v829_v42  ;;  %v836_v32 = vld [vmem:[#allocation2 + $0x10] sm:$0xff]  ;;  %v835_v49 = vld [vmem:[#allocation2 + $0x58] sm:$0xff] }
 0x18c   : > { %890 = vmatprep.subr.mxu0 %v836_v32 }
 0x18d   : > { %891 = vmatpush1.msra.mxu0 %v835_v49  ;;  %v824_v62 = vld [vmem:[#allocation2 + $0x38] sm:$0xff] }
 0x18e   : > { %892 = vmatprep.subr.mxu0 %v832_v53 }
 0x18f   : > { %893 = vmatpush1.msra.mxu0 %v831_v54 }
 0x190   : > { %894 = vmatprep.subr.mxu0 %v828_v55 }
 0x191   : > { %895 = vmatpush1.msra.mxu0 %v827_v61  ;;  %v825_v9 = vld [vmem:[#allocation2 + $0x50] sm:$0xff]  ;;  %v823_v10 = vld [vmem:[#allocation2] sm:$0xff] }
 0x192   : > { %v826_v2 = vld [vmem:[#allocation2 + $0x18] sm:$0xff]  ;;  %896 = vmatprep.subr.mxu0 %v824_v62  ;;  %v1675_v62 = vld [vmem:[%s2277_s1 + $0x4] sm:$0xf] }
 0x193   : > { %967 = vmatprep.subr.mxu1 %v826_v2  ;;  %897 = vmatpush1.msra.mxu0 %v823_v10  ;;  %v847_v33 = vpop.permute.xlu1 %846 }
 0x194   : > { %968 = vmatpush1.msra.mxu1 %v825_v9  ;;  %1671 = vmatmul.mubr.msk.f32.vlgmr.msra.gmra.mxu0 %vm849_vm10, %v822_v38 }
 0x195   : > { %1674 = vmatmul.mubr.msk.f32.vlgmr.msra.gmra.mxu1 %vm849_vm10, %v822_v38  ;;  %1096 = vmatprep.mubr.f32.mxu0 %v1719_v0 }
 0x196   : > { %1167 = vmatprep.mubr.f32.mxu1 %v1719_v0 }
 0x254   : > { %v932_v11 = vpop.f32.mrf.mxu0 }
 0x255   : > { %v1003_v34 = vpop.f32.mrf.mxu1  ;;  %v933_v17 = vadd.f32 %v932_v11, %v847_v33 }
 0x256   : > { %v1004_v8 = vadd.f32 %v1003_v34, %v847_v33  ;;  %v934_v23 = vpop.f32.mrf.mxu0 }
 0x257   : > { %v1005_v26 = vpop.f32.mrf.mxu1  ;;  %v1008_v20 = vmul.f32 0.1, %v933_v17  ;;  %v935_v43 = vadd.f32 %v934_v23, %v847_v33 }
 0x258   : > { %v1010_v27 = vmul.f32 0.1, %v1004_v8  ;;  %v1006_v29 = vadd.f32 %v1005_v26, %v847_v33 }
 0x259   : > { %v1009_v35 = vmul.f32 0.1, %v935_v43  ;;  %v1012_v30 = vmax.f32 %v933_v17, %v1008_v20 }
 0x25a   : > { %v1011_v45 = vmul.f32 0.1, %v1006_v29  ;;  %v1014_v42 = vmax.f32 %v1004_v8, %v1010_v27 }
 0x25b   : > { %v1013_v32 = vmax.f32 %v935_v43, %v1009_v35  ;;  %v2108_v55 = vadd.f32 %v1012_v30, %v1792_v6 }
 0x25c   : > { %v1015_v49 = vmax.f32 %v1006_v29, %v1011_v45  ;;  %v2111_v61 = vadd.f32 %v1014_v42, %v1796_v7 }
 0x25d   : > { %v2102_v53 = vadd.f32 %v1013_v32, %v1788_v4  ;;  %v1027_v4 = vpop.permute.xlu0 %1026 }
 0x25e   : > { %v2105_v54 = vadd.f32 %v1015_v49, %v1790_v5 }
 0x25f   : > { %1062 = vmatprep.subr.mxu0 %v2102_v53 }
 0x260   : > { %1133 = vmatprep.subr.mxu1 %v2105_v54  ;;  %1063 = vmatpush1.msra.mxu0 %v2108_v55 }
 0x261   : > { %1134 = vmatpush1.msra.mxu1 %v2111_v61  ;;  %1677 = vmatmul.mubr.msk.f32.vlgmr.msra.gmra.mxu0 %vm446_vm0, %v1675_v62 }
 0x262   : > { %1678 = vmatmul.mubr.msk.f32.vlgmr.msra.gmra.mxu1 %vm446_vm0, %v1675_v62  ;;  %1502 = vmatprep.mubr.f32.mxu0 %v1719_v0 }
 0x263   : > { %1573 = vmatprep.mubr.f32.mxu1 %v1719_v0  ;;  %v1680_v0 = vld [vmem:[%s2280_s4 + $0x8] sm:$0xff] }
 0x321   : > { %v1098_v5 = vpop.f32.mrf.mxu0 }
 0x322   : > { %v1169_v6 = vpop.f32.mrf.mxu1  ;;  %v1099_v7 = vadd.f32 %v1098_v5, %v1027_v4 }
 0x323   : > { %v1170_v38 = vadd.f32 %v1169_v6, %v1027_v4  ;;  %v1100_v2 = vpop.f32.mrf.mxu0 }
 0x324   : > { %v1171_v9 = vpop.f32.mrf.mxu1  ;;  %v1174_v10 = vmul.f32 0.1, %v1099_v7  ;;  %v1101_v11 = vadd.f32 %v1100_v2, %v1027_v4 }
 0x325   : > { %v1176_v33 = vmul.f32 0.1, %v1170_v38  ;;  %v1172_v34 = vadd.f32 %v1171_v9, %v1027_v4 }
 0x326   : > { %v1178_v17 = vmax.f32 %v1099_v7, %v1174_v10  ;;  %v1175_v23 = vmul.f32 0.1, %v1101_v11 }
 0x327   : > { %v1180_v8 = vmax.f32 %v1170_v38, %v1176_v33  ;;  %v1177_v26 = vmul.f32 0.1, %v1172_v34 }
 0x328   : > { %1286 = vst [vmem:[#allocation2 + $0x8] sm:$0xf] %v1178_v17  ;;  %v1179_v20 = vmax.f32 %v1101_v11, %v1175_v23  ;;  %1342 = vrot.lane.b32.xlu1 %v1178_v17, %s1721_s7 }
 0x329   : > { %1288 = vst [vmem:[#allocation2 + $0x28] sm:$0xf] %v1180_v8  ;;  %v1181_v27 = vmax.f32 %v1172_v34, %v1177_v26 }
 0x32a   : > { %1287 = vst [vmem:[#allocation2 + $0x88] sm:$0xf] %v1179_v20  ;;  %1344 = vrot.lane.b32.xlu0 %v1179_v20, %s1721_s7 }
 0x32b   : > { %1289 = vst [vmem:[#allocation2 + $0x40] sm:$0xf] %v1181_v27 }
 0x32c   : > { %1346 = vrot.lane.b32.xlu1 %v1180_v8, %s1721_s7 }
 0x32e   : > { %1348 = vrot.lane.b32.xlu0 %v1181_v27, %s1721_s7 }
 0x330   : > { %1374 = vrot.lane.b32.xlu1 %v1178_v17, %s1722_s8 }
 0x332   : > { %1376 = vrot.lane.b32.xlu0 %v1179_v20, %s1722_s8 }
 0x334   : > { %1378 = vrot.lane.b32.xlu1 %v1180_v8, %s1722_s8 }
 0x336   : > { %1380 = vrot.lane.b32.xlu0 %v1181_v27, %s1722_s8 }
 0x338   : > { %1290 = vrot.lane.b32.xlu1 %v1178_v17, %s1723_s9 }
 0x33a   : > { %1292 = vrot.lane.b32.xlu0 %v1179_v20, %s1723_s9 }
 0x33c   : > { %1294 = vrot.lane.b32.xlu1 %v1180_v8, %s1723_s9 }
 0x33e   : > { %1296 = vrot.lane.b32.xlu0 %v1181_v27, %s1723_s9 }
 0x340   : > { %1322 = vrot.lane.b32.xlu1 %v1178_v17, %s1724_s10 }
 0x342   : > { %1324 = vrot.lane.b32.xlu0 %v1179_v20, %s1724_s10 }
 0x344   : > { %1326 = vrot.lane.b32.xlu1 %v1180_v8, %s1724_s10 }
 0x346   : > { %1328 = vrot.lane.b32.xlu0 %v1181_v27, %s1724_s10 }
 0x348   : > { %1254 = vrot.lane.b32.xlu1 %v1178_v17, %s1725_s11 }
 0x34a   : > { %1256 = vrot.lane.b32.xlu0 %v1179_v20, %s1725_s11 }
 0x34c   : > { %1258 = vrot.lane.b32.xlu1 %v1180_v8, %s1725_s11 }
 0x34e   : > { %1260 = vrot.lane.b32.xlu0 %v1181_v27, %s1725_s11 }
 0x350   : > { %1202 = vrot.lane.b32.xlu1 %v1178_v17, %s1726_s12 }
 0x352   : > { %1204 = vrot.lane.b32.xlu0 %v1179_v20, %s1726_s12 }
 0x354   : > { %1206 = vrot.lane.b32.xlu1 %v1180_v8, %s1726_s12 }
 0x356   : > { %1208 = vrot.lane.b32.xlu0 %v1181_v27, %s1726_s12 }
 0x358   : > { %1234 = vrot.lane.b32.xlu1 %v1178_v17, %s1727_s13 }
 0x35a   : > { %1236 = vrot.lane.b32.xlu0 %v1179_v20, %s1727_s13 }
 0x35c   : > { %1238 = vrot.lane.b32.xlu1 %v1180_v8, %s1727_s13 }
 0x35e   : > { %1240 = vrot.lane.b32.xlu0 %v1181_v27, %s1727_s13  ;;  %s251_s13 = scalar_lea.vmem %s2282_s6, %s1689_s25 }
 0x360   : > { %1182 = vrot.lane.b32.xlu1 %v1178_v17, %s1728_s14 }
 0x362   : > { %1184 = vrot.lane.b32.xlu0 %v1179_v20, %s1728_s14 }
 0x364   : > { %1186 = vrot.lane.b32.xlu1 %v1180_v8, %s1728_s14 }
 0x366   : > { %1188 = vrot.lane.b32.xlu0 %v1181_v27, %s1728_s14 }
 0x368   : > { %1420 = vperm.xlu1 %1710, %v1680_v0  }
 0x39a   : > { %v1343_v43 = vpop.permute.xlu1 %1342 }
 0x39c   : > { %v1345_v29 = vpop.permute.xlu0 %1344 }
 0x39d   : > { %v1352_v35 = vsel %vm776_vm1, %v1343_v43, %v1345_v29 }
 0x39e   : > { %v1354_v45 = vmul.f32 %v1352_v35, %v2038_v40  ;;  %v1347_v30 = vpop.permute.xlu1 %1346 }
 0x39f   : > { %v1351_v42 = vsel %vm776_vm1, %v1345_v29, %v1347_v30 }
 0x3a0   : > { %v1362_v32 = vrot.slane %v1354_v45, 4  ;;  %v1355_v49 = vmul.f32 %v1351_v42, %v2042_v41  ;;  %v1349_v62 = vpop.permute.xlu0 %1348 }
 0x3a1   : > { %v1350_v4 = vsel %vm776_vm1, %v1347_v30, %v1349_v62  ;;  %v1353_v5 = vsel %vm776_vm1, %v1349_v62, %v1343_v43 }
 0x3a2   : > { %1370 = vst [vmem:[#allocation2 + $0x58] sm:$0xf0] %v1362_v32  ;;  %v1363_v6 = vrot.slane %v1355_v49, 4  ;;  %v1356_v7 = vmul.f32 %v1350_v4, %v1861_v36  ;;  %v1357_v40 = vmul.f32 %v1353_v5, %v1865_v37  ;;  %v1375_v38 = vpop.permute.xlu1 %1374 }
 0x3a4   : > { %1371 = vst [vmem:[#allocation2 + $0x10] sm:$0xf0] %v1363_v6  ;;  %v1364_v2 = vrot.slane %v1356_v7, 4  ;;  %v1365_v9 = vrot.slane %v1357_v40, 4  ;;  %v1377_v10 = vpop.permute.xlu0 %1376 }
 0x3a5   : > { %v1384_v41 = vsel %vm809_vm2, %v1375_v38, %v1377_v10 }
 0x3a6   : > { %1372 = vst [vmem:[#allocation2 + $0x98] sm:$0xf0] %v1364_v2  ;;  %1373 = vst [vmem:[#allocation2 + $0x60] sm:$0xf0] %v1365_v9  ;;  %v1386_v33 = vmul.f32 %v1384_v41, %v1880_v44  ;;  %v1379_v11 = vpop.permute.xlu1 %1378 }
 0x3a7   : > { %v1383_v34 = vsel %vm809_vm2, %v1377_v10, %v1379_v11 }
 0x3a8   : > { %1390 = vst [vmem:[#allocation2 + $0x20] sm:$0xf] %v1386_v33  ;;  %v1387_v36 = vmul.f32 %v1383_v34, %v1885_v47  ;;  %v1381_v37 = vpop.permute.xlu0 %1380 }
 0x3a9   : > { %v1382_v17 = vsel %vm809_vm2, %v1379_v11, %v1381_v37  ;;  %v1385_v8 = vsel %vm809_vm2, %v1381_v37, %v1375_v38 }
 0x3aa   : > { %1391 = vst [vmem:[#allocation2 + $0x48] sm:$0xf] %v1387_v36  ;;  %v1388_v23 = vmul.f32 %v1382_v17, %v1895_v56  ;;  %v1389_v26 = vmul.f32 %v1385_v8, %v1898_v57  ;;  %v1291_v44 = vpop.permute.xlu1 %1290 }
 0x3ac   : > { %1392 = vst [vmem:[#allocation2 + $0x70] sm:$0xf] %v1388_v23  ;;  %1393 = vst [vmem:[#allocation2 + $0x90] sm:$0xf] %v1389_v26  ;;  %v1293_v20 = vpop.permute.xlu0 %1292 }
 0x3ad   : > { %v1300_v27 = vsel %vm722_vm3, %v1291_v44, %v1293_v20 }
 0x3ae   : > { %v1302_v47 = vmul.f32 %v1300_v27, %v1908_v63  ;;  %v1295_v0 = vpop.permute.xlu1 %1294 }
 0x3af   : > { %v1299_v43 = vsel %vm722_vm3, %v1293_v20, %v1295_v0  ;;  %v1412_v62 = vld [vmem:[#allocation2 + $0x20] sm:$0xf] }
 0x3b0   : > { %v1310_v29 = vrot.slane %v1302_v47, 4  ;;  %v1303_v35 = vmul.f32 %v1299_v43, %v1913_v3  ;;  %v1297_v45 = vpop.permute.xlu0 %1296 }
 0x3b1   : > { %v1298_v56 = vsel %vm722_vm3, %v1295_v0, %v1297_v45  ;;  %v1301_v57 = vsel %vm722_vm3, %v1297_v45, %v1291_v44  ;;  %v1413_v30 = vld [vmem:[#allocation2 + $0x48] sm:$0xf] }
 0x3b2   : > { %1318 = vst [vmem:[#allocation2 + $0x8] sm:$0xf0] %v1310_v29  ;;  %v1311_v42 = vrot.slane %v1303_v35, 4  ;;  %v1304_v32 = vmul.f32 %v1298_v56, %v1923_v14  ;;  %v1305_v63 = vmul.f32 %v1301_v57, %v1926_v15  ;;  %1681 = vmatprep.subr.msk.mxu0 %vm853_vm4, %v1413_v30  ;;  %v1323_v49 = vpop.permute.xlu1 %1322 }
 0x3b3   : > { %1682 = vmatpush1.msk.msra.mxu0 %vm853_vm4, %v1412_v62  ;;  %v1415_v3 = vld [vmem:[#allocation2 + $0x90] sm:$0xf] }
 0x3b4   : > { %v1414_v4 = vld [vmem:[#allocation2 + $0x70] sm:$0xf]  ;;  %1319 = vst [vmem:[#allocation2 + $0x88] sm:$0xf0] %v1311_v42  ;;  %v1312_v5 = vrot.slane %v1304_v32, 4  ;;  %v1313_v6 = vrot.slane %v1305_v63, 4  ;;  %v1325_v7 = vpop.permute.xlu0 %1324  ;;  %1684 = vmatprep.subr.msk.mxu1 %vm853_vm4, %v1415_v3 }
 0x3b5   : > { %v1332_v40 = vsel %vm755_vm5, %v1323_v49, %v1325_v7  ;;  %1685 = vmatpush1.msk.msra.mxu1 %vm853_vm4, %v1414_v4 }
 0x3b6   : > { %1320 = vst [vmem:[#allocation2 + $0x28] sm:$0xf0] %v1312_v5  ;;  %1321 = vst [vmem:[#allocation2 + $0x40] sm:$0xf0] %v1313_v6  ;;  %v1334_v14 = vmul.f32 %v1332_v40, %v1938_v25  ;;  %v1327_v15 = vpop.permute.xlu1 %1326 }
 0x3b7   : > { %v1331_v38 = vsel %vm755_vm5, %v1325_v7, %v1327_v15 }
 0x3b8   : > { %1338 = vst [vmem:[#allocation2 + $0x58] sm:$0xf] %v1334_v14  ;;  %v1335_v2 = vmul.f32 %v1331_v38, %v1943_v28  ;;  %v1329_v9 = vpop.permute.xlu0 %1328 }
 0x3b9   : > { %v1330_v10 = vsel %vm755_vm5, %v1327_v15, %v1329_v9  ;;  %v1333_v41 = vsel %vm755_vm5, %v1329_v9, %v1323_v49  ;;  %v1404_v57 = vld [vmem:[#allocation2 + $0x8] sm:$0xff] }
 0x3ba   : > { %1339 = vst [vmem:[#allocation2 + $0x10] sm:$0xf] %v1335_v2  ;;  %v1336_v33 = vmul.f32 %v1330_v10, %v1955_v51  ;;  %v1337_v11 = vmul.f32 %v1333_v41, %v1958_v52  ;;  %v1255_v25 = vpop.permute.xlu1 %1254 }
 0x3bb   : > { %v1405_v43 = vld [vmem:[#allocation2 + $0x88] sm:$0xff] }
 0x3bc   : > { %1340 = vst [vmem:[#allocation2 + $0x98] sm:$0xf] %v1336_v33  ;;  %1341 = vst [vmem:[#allocation2 + $0x60] sm:$0xf] %v1337_v11  ;;  %v1257_v34 = vpop.permute.xlu0 %1256 }
 0x3bd   : > { %v1264_v36 = vsel %vm685_vm6, %v1255_v25, %v1257_v34  ;;  %v1406_v32 = vld [vmem:[#allocation2 + $0x28] sm:$0xff] }
 0x3be   : > { %v1267_v28 = vmul.f32 %v1264_v36, %v1968_v60  ;;  %v1259_v37 = vpop.permute.xlu1 %1258 }
 0x3bf   : > { %v1263_v17 = vsel %vm685_vm6, %v1257_v34, %v1259_v37  ;;  %v1408_v0 = vld [vmem:[#allocation2 + $0x58] sm:$0xff] }
 0x3c0   : > { %v1275_v8 = vrot.slane %v1267_v28, 4  ;;  %v1268_v23 = vmul.f32 %v1263_v17, %v1973_v1  ;;  %v1261_v26 = vpop.permute.xlu0 %1260 }
 0x3c1   : > { %v1262_v51 = vsel %vm685_vm6, %v1259_v37, %v1261_v26  ;;  %v1265_v52 = vsel %vm685_vm6, %v1261_v26, %v1255_v25  ;;  %v1409_v44 = vld [vmem:[#allocation2 + $0x10] sm:$0xff] }
 0x3c2   : > { %1283 = vst [vmem:[#allocation2 + $0x68] sm:$0xf0] %v1275_v8  ;;  %v1276_v20 = vrot.slane %v1268_v23, 4  ;;  %v1266_v27 = vmul.f32 %v1265_v52, %v1983_v13  ;;  %v1269_v60 = vmul.f32 %v1262_v51, %v1986_v16  ;;  %1462 = vmatprep.subr.mxu0 %v1409_v44  ;;  %v1203_v47 = vpop.permute.xlu1 %1202  ;;  %v1407_v13 = vld [vmem:[#allocation2 + $0x40] sm:$0xff] }
 0x3c3   : > { %1463 = vmatpush1.msra.mxu0 %v1408_v0  ;;  %v1411_v1 = vld [vmem:[#allocation2 + $0x60] sm:$0xff]  ;;  %v1410_v29 = vld [vmem:[#allocation2 + $0x98] sm:$0xff] }
 0x3c4   : > { %1284 = vst [vmem:[#allocation2 + $0x78] sm:$0xf0] %v1276_v20  ;;  %v1274_v35 = vrot.slane %v1266_v27, 4  ;;  %v1277_v45 = vrot.slane %v1269_v60, 4  ;;  %v1205_v56 = vpop.permute.xlu0 %1204  ;;  %1464 = vmatprep.subr.mxu0 %v1405_v43  ;;  %1533 = vmatprep.subr.mxu1 %v1411_v1 }
 0x3c5   : > { %v1212_v30 = vsel %vm631_vm7, %v1203_v47, %v1205_v56  ;;  %1465 = vmatpush1.msra.mxu0 %v1404_v57  ;;  %1534 = vmatpush1.msra.mxu1 %v1410_v29 }
 0x3c6   : > { %1282 = vst [vmem:[#allocation2 + $0x30] sm:$0xf0] %v1274_v35  ;;  %1285 = vst [vmem:[#allocation2 + $0x80] sm:$0xf0] %v1277_v45  ;;  %v1215_v16 = vmul.f32 %v1212_v30, %v1996_v24  ;;  %1535 = vmatprep.subr.mxu1 %v1407_v13  ;;  %v1207_v42 = vpop.permute.xlu1 %1206 }
 0x3c7   : > { %v1211_v63 = vsel %vm631_vm7, %v1205_v56, %v1207_v42  ;;  %1536 = vmatpush1.msra.mxu1 %v1406_v32 }
 0x3c8   : > { %v1223_v49 = vrot.slane %v1215_v16, 4  ;;  %v1216_v62 = vmul.f32 %v1211_v63, %v2001_v39  ;;  %v1209_v3 = vpop.permute.xlu0 %1208 }
 0x3c9   : > { %v1210_v4 = vsel %vm631_vm7, %v1207_v42, %v1209_v3  ;;  %v1213_v5 = vsel %vm631_vm7, %v1209_v3, %v1203_v47 }
 0x3ca   : > { %1231 = vst [vmem:[#allocation2 + $0x38] sm:$0xf0] %v1223_v49  ;;  %v1224_v6 = vrot.slane %v1216_v62, 4  ;;  %v1214_v24 = vmul.f32 %v1213_v5, %v2011_v58  ;;  %v1217_v7 = vmul.f32 %v1210_v4, %v2014_v59  ;;  %v1235_v40 = vpop.permute.xlu1 %1234 }
 0x3cc   : > { %1232 = vst [vmem:[#allocation2 + $0x50] sm:$0xf0] %v1224_v6  ;;  %v1222_v14 = vrot.slane %v1214_v24, 4  ;;  %v1225_v15 = vrot.slane %v1217_v7, 4  ;;  %v1237_v38 = vpop.permute.xlu0 %1236 }
 0x3cd   : > { %v1244_v39 = vsel %vm664_vm8, %v1235_v40, %v1237_v38 }
 0x3ce   : > { %1230 = vst [vmem:[#allocation2] sm:$0xf0] %v1222_v14  ;;  %1233 = vst [vmem:[#allocation2 + $0x18] sm:$0xf0] %v1225_v15  ;;  %v1247_v2 = vmul.f32 %v1244_v39, %v2024_v12  ;;  %v1239_v9 = vpop.permute.xlu1 %1238 }
 0x3cf   : > { %v1243_v10 = vsel %vm664_vm8, %v1237_v38, %v1239_v9 }
 0x3d0   : > { %1251 = vst [vmem:[#allocation2 + $0x68] sm:$0xf] %v1247_v2  ;;  %v1248_v58 = vmul.f32 %v1243_v10, %v2029_v19  ;;  %v1241_v59 = vpop.permute.xlu0 %1240 }
 0x3d1   : > { %v1242_v41 = vsel %vm664_vm8, %v1239_v9, %v1241_v59  ;;  %v1245_v33 = vsel %vm664_vm8, %v1241_v59, %v1235_v40 }
 0x3d2   : > { %1252 = vst [vmem:[#allocation2 + $0x78] sm:$0xf] %v1248_v58  ;;  %v1246_v11 = vmul.f32 %v1245_v33, %v2050_v46  ;;  %v1249_v25 = vmul.f32 %v1242_v41, %v2053_v48  ;;  %v1183_v12 = vpop.permute.xlu1 %1182 }
 0x3d4   : > { %1250 = vst [vmem:[#allocation2 + $0x30] sm:$0xf] %v1246_v11  ;;  %1253 = vst [vmem:[#allocation2 + $0x80] sm:$0xf] %v1249_v25  ;;  %v1185_v34 = vpop.permute.xlu0 %1184 }
 0x3d5   : > { %v1192_v36 = vsel %vm610_vm9, %v1183_v12, %v1185_v34 }
 0x3d6   : > { %v1195_v19 = vmul.f32 %v1192_v36, %v2056_v50  ;;  %v1187_v28 = vpop.permute.xlu1 %1186 }
 0x3d7   : > { %v1191_v37 = vsel %vm610_vm9, %v1185_v34, %v1187_v28  ;;  %v1401_v17 = vld [vmem:[#allocation2 + $0x68] sm:$0xff] }
 0x3d8   : > { %1199 = vst [vmem:[#allocation2 + $0x38] sm:$0xf] %v1195_v19  ;;  %v1196_v8 = vmul.f32 %v1191_v37, %v2077_v18  ;;  %v1189_v46 = vpop.permute.xlu0 %1188  ;;  %1466 = vmatprep.subr.mxu0 %v1401_v17 }
 0x3d9   : > { %v1190_v48 = vsel %vm610_vm9, %v1187_v28, %v1189_v46  ;;  %v1193_v23 = vsel %vm610_vm9, %v1189_v46, %v1183_v12  ;;  %v1402_v18 = vld [vmem:[#allocation2 + $0x78] sm:$0xff] }
 0x3da   : > { %1200 = vst [vmem:[#allocation2 + $0x50] sm:$0xf] %v1196_v8  ;;  %v1194_v26 = vmul.f32 %v1193_v23, %v2080_v21  ;;  %v1197_v50 = vmul.f32 %v1190_v48, %v2083_v22 }
 0x3db   : > { %v1400_v51 = vld [vmem:[#allocation2 + $0x30] sm:$0xff]  ;;  %v1403_v52 = vld [vmem:[#allocation2 + $0x80] sm:$0xff] }
 0x3dc   : > { %1198 = vst [vmem:[#allocation2] sm:$0xf] %v1194_v26  ;;  %1201 = vst [vmem:[#allocation2 + $0x18] sm:$0xf] %v1197_v50  ;;  %1467 = vmatpush1.msra.mxu0 %v1400_v51  ;;  %1537 = vmatprep.subr.mxu1 %v1403_v52 }
 0x3dd   : > { %1538 = vmatpush1.msra.mxu1 %v1402_v18 }
 0x3df   : > { %v1397_v44 = vld [vmem:[#allocation2 + $0x38] sm:$0xff] }
 0x3e0   : > { %1468 = vmatprep.subr.mxu0 %v1397_v44 }
 0x3e1   : > { %v1398_v21 = vld [vmem:[#allocation2 + $0x50] sm:$0xff] }
 0x3e3   : > { %v1396_v20 = vld [vmem:[#allocation2] sm:$0xff]  ;;  %v1399_v27 = vld [vmem:[#allocation2 + $0x18] sm:$0xff]  ;;  %v1421_v22 = vpop.permute.xlu1 %1420 }
 0x3e4   : > { %1469 = vmatpush1.msra.mxu0 %v1396_v20  ;;  %1539 = vmatprep.subr.mxu1 %v1399_v27 }
 0x3e5   : > { %1683 = vmatmul.mubr.msk.f32.vlgmr.msra.gmra.mxu0 %vm849_vm10, %v1679_v31  ;;  %1540 = vmatpush1.msra.mxu1 %v1398_v21 }
 0x3e6   : > { %1686 = vmatmul.mubr.msk.f32.vlgmr.msra.gmra.mxu1 %vm849_vm10, %v1679_v31 }
 0x4a5   : > { %v1504_v60 = vpop.f32.mrf.mxu0 }
 0x4a6   : > { %v1505_v47 = vadd.f32 %v1504_v60, %v1421_v22  ;;  %v1575_v0 = vpop.f32.mrf.mxu1 }
 0x4a7   : > { %v1576_v43 = vadd.f32 %v1575_v0, %v1421_v22  ;;  %v1506_v1 = vpop.f32.mrf.mxu0 }
 0x4a8   : > { %v1580_v29 = vmul.f32 0.1, %v1505_v47  ;;  %v1507_v35 = vadd.f32 %v1506_v1, %v1421_v22  ;;  %v1577_v45 = vpop.f32.mrf.mxu1 }
 0x4a9   : > { %v1582_v56 = vmul.f32 0.1, %v1576_v43  ;;  %v1578_v57 = vadd.f32 %v1577_v45, %v1421_v22 }
 0x4aa   : > { %v1584_v30 = vmax.f32 %v1505_v47, %v1580_v29  ;;  %v1581_v13 = vmul.f32 0.1, %v1507_v35 }
 0x4ab   : > { %v1586_v16 = vmax.f32 %v1576_v43, %v1582_v56  ;;  %v1583_v42 = vmul.f32 0.1, %v1578_v57 }
 0x4ac   : > { %v1588_v32 = vadd.f32 %v1584_v30, %v2108_v55  ;;  %v1585_v63 = vmax.f32 %v1507_v35, %v1581_v13 }
 0x4ad   : > { %v1590_v49 = vadd.f32 %v1586_v16, %v2111_v61  ;;  %v1587_v62 = vmax.f32 %v1578_v57, %v1583_v42 }
 0x4ae   : > { %1592 = vst [vmem:[%s251_s13] sm:$0xff] %v1588_v32  ;;  %v1589_v3 = vadd.f32 %v1585_v63, %v2102_v53 }
 0x4af   : > { %1594 = vst [vmem:[%s251_s13 + $0x10] sm:$0xff] %v1590_v49  ;;  %v1591_v4 = vadd.f32 %v1587_v62, %v2105_v54 }
 0x4b0   : > { %1593 = vst [vmem:[%s251_s13 + $0x8] sm:$0xff] %v1589_v3 }
 0x4b1   : > { %1595 = vst [vmem:[%s251_s13 + $0x18] sm:$0xff] %v1591_v4 }
 0x4b2 PF: > { %s16_s21 = sadd.s32 1, %s1717_s21  }
 0x4b3   : > { %p13_p4 = scmp.ge.s32.totalorder %s16_s21, 4  }
 0x4b5   :  { %15 = sbr.rel (!%p13_p4) target bundleno = 1 (0x1), region = 85 }

</bundles_post_ra>
